<compile_context>
chip_gen: v6e
topology: v6e:2x2x1
jax: 0.10.0
libtpu: 0.0.40
codegen_flags: <defaults>
</compile_context>

<pallas_src>
import jax
import jax.numpy as jnp
from jax import lax
from jax.experimental import pallas as pl
from jax.experimental.pallas import tpu as pltpu


# ---------------------------------------------------------------------------
# Pallas kernels
# ---------------------------------------------------------------------------
def _conv_relu_pool_kernel(p_ref, w_ref, b_ref, o_ref):
    # p_ref: (Bblk, 4*P, K)  im2col patches for a block of images (bf16),
    #                        rows phase-blocked for pooling.
    # w_ref: (K, C)          flattened conv weight (cin, kh, kw) x C_out (bf16)
    # b_ref: (1, C)          bias (f32)
    # o_ref: (Bblk, P, C)    pooled output (f32), P = Hp * Wp
    bblk, four_p, k = p_ref.shape
    p_pool = four_p // 4
    c = w_ref.shape[1]

    # One big GEMM for the whole image block (M = Bblk*4P).
    p = p_ref[...].reshape(bblk * four_p, k)
    z = jnp.dot(p, w_ref[...], preferred_element_type=jnp.float32)
    z = jnp.maximum(z + b_ref[...], 0.0)

    # 2x2 max-pool = elementwise max over the 4 phase slabs (sublane-aligned).
    z = z.reshape(bblk, 4, p_pool, c)
    m = jnp.maximum(jnp.maximum(z[:, 0], z[:, 1]),
                    jnp.maximum(z[:, 2], z[:, 3]))
    o_ref[...] = m


def conv_relu_pool(patches, w_mat, bias, bblk):
    B, four_p, K = patches.shape
    Kw, C = w_mat.shape
    P = four_p // 4
    nb = B // bblk
    return pl.pallas_call(
        _conv_relu_pool_kernel,
        out_shape=jax.ShapeDtypeStruct((B, P, C), jnp.float32),
        grid_spec=pltpu.PrefetchScalarGridSpec(
            num_scalar_prefetch=0,
            grid=(nb,),
            in_specs=[
                pl.BlockSpec((bblk, four_p, K), lambda b: (b, 0, 0)),
                pl.BlockSpec((Kw, C), lambda b: (0, 0)),
                pl.BlockSpec((1, C), lambda b: (0, 0)),
            ],
            out_specs=pl.BlockSpec((bblk, P, C), lambda b: (b, 0, 0)),
        ),
        compiler_params=pltpu.CompilerParams(
            dimension_semantics=("parallel",)),
    )(patches, w_mat, bias)


def _linear_kernel(x_ref, w_ref, b_ref, o_ref):
    o_ref[...] = (jnp.dot(x_ref[...], w_ref[...],
                          preferred_element_type=jnp.float32) + b_ref[...])


def linear(x, w_t, bias, bblk):
    B, K = x.shape
    _, N = w_t.shape
    nb = B // bblk
    return pl.pallas_call(
        _linear_kernel,
        out_shape=jax.ShapeDtypeStruct((B, N), jnp.float32),
        grid=(nb,),
        in_specs=[
            pl.BlockSpec((bblk, K), lambda i: (i, 0)),
            pl.BlockSpec((K, N), lambda i: (0, 0)),
            pl.BlockSpec((1, N), lambda i: (0, 0)),
        ],
        out_specs=pl.BlockSpec((bblk, N), lambda i: (i, 0)),
        compiler_params=pltpu.CompilerParams(
            dimension_semantics=("parallel",)),
    )(x, w_t, bias)


# ---------------------------------------------------------------------------
# JAX glue: im2col with pool-phase-blocked row ordering
# ---------------------------------------------------------------------------
def im2col_pool_order(x_nhwc, ksize=5):
    """Valid 5x5 conv patches, rows ordered [(0,0)|(0,1)|(1,0)|(1,1)] pooling
    phases, each phase row-major over the pooled grid.  Features flattened in
    (cin, kh, kw) order to match PyTorch Conv2d weight layout (O, I, H, W)."""
    B, H, W, Cin = x_nhwc.shape
    Hout, Wout = H - ksize + 1, W - ksize + 1
    Hp, Wp = Hout // 2, Wout // 2
    phase_blocks = []
    for a in (0, 1):
        for b in (0, 1):
            taps_di = []
            for di in range(ksize):
                taps_dj = []
                for dj in range(ksize):
                    sl = x_nhwc[:, a + di:a + di + 2 * Hp:2,
                                b + dj:b + dj + 2 * Wp:2, :]   # (B,Hp,Wp,Cin)
                    taps_dj.append(sl)
                taps_di.append(jnp.stack(taps_dj, axis=-1))    # (B,Hp,Wp,Cin,kw)
            patch = jnp.stack(taps_di, axis=-2)                # (B,Hp,Wp,Cin,kh,kw)
            phase_blocks.append(patch.reshape(B, Hp * Wp, Cin * ksize * ksize))
    return jnp.concatenate(phase_blocks, axis=1)               # (B, 4*Hp*Wp, Cin*k*k)


def _pick_bblk(B, max_bblk=8):
    """Images per grid step.  Must be a multiple of 8 or equal the (padded)
    batch so BlockSpec last-two-dim rules hold for the 2D linear blocks."""
    if B < 8:
        return B, B
    bblk = max_bblk
    bpad = ((B + bblk - 1) // bblk) * bblk
    return bblk, bpad


# ---------------------------------------------------------------------------
# CNN3 forward (Pallas) and pure-JAX reference
# ---------------------------------------------------------------------------
def cnn3_forward(x_nchw, params):
    w1, b1 = params["w1"], params["b1"]
    w2, b2 = params["w2"], params["b2"]
    wo, bo = params["wo"], params["bo"]
    B = x_nchw.shape[0]
    bblk, bpad = _pick_bblk(B)

    x = jnp.transpose(x_nchw, (0, 2, 3, 1)).astype(jnp.float32)  # NHWC (B,28,28,1)
    if bpad != B:
        x = jnp.pad(x, ((0, bpad - B), (0, 0), (0, 0), (0, 0)))

    # conv1 + ReLU + maxpool -> (bpad, 12, 12, 16)
    p1 = im2col_pool_order(x).astype(jnp.bfloat16)               # (bpad,576,25)
    w1m = w1.reshape(16, -1).T.astype(jnp.bfloat16)              # (25,16)
    y1 = conv_relu_pool(p1, w1m, b1.reshape(1, -1).astype(jnp.float32), bblk)
    y1 = y1.reshape(bpad, 12, 12, 16)

    # conv2 + ReLU + maxpool -> (bpad, 16, 32) i.e. (4*4, 32)
    p2 = im2col_pool_order(y1).astype(jnp.bfloat16)              # (bpad,64,400)
    w2m = w2.reshape(32, -1).T.astype(jnp.bfloat16)              # (400,32)
    y2 = conv_relu_pool(p2, w2m, b2.reshape(1, -1).astype(jnp.float32), bblk)

    # flatten in PyTorch NCHW order (c, h, w)
    x_flat = jnp.transpose(y2, (0, 2, 1)).reshape(bpad, 32 * 4 * 4)

    # output Linear with lane-dense padded N (10 -> 128), sliced back
    N = wo.shape[0]
    n_pad = ((N + 127) // 128) * 128
    wo_p = jnp.pad(wo.T.astype(jnp.float32), ((0, 0), (0, n_pad - N)))
    bo_p = jnp.pad(bo.astype(jnp.float32), (0, n_pad - N)).reshape(1, n_pad)
    out = linear(x_flat, wo_p, bo_p, bblk)[:, :N]

    return out[:B], x_flat[:B]


def cnn3_reference(x_nchw, params):
    dn = ("NCHW", "OIHW", "NCHW")
    y = lax.conv_general_dilated(x_nchw, params["w1"], (1, 1), "VALID",
                                 dimension_numbers=dn)
    y = jnp.maximum(y + params["b1"][None, :, None, None], 0.0)
    y = lax.reduce_window(y, -jnp.inf, lax.max, (1, 1, 2, 2), (1, 1, 2, 2), "VALID")
    y = lax.conv_general_dilated(y, params["w2"], (1, 1), "VALID",
                                 dimension_numbers=dn)
    y = jnp.maximum(y + params["b2"][None, :, None, None], 0.0)
    y = lax.reduce_window(y, -jnp.inf, lax.max, (1, 1, 2, 2), (1, 1, 2, 2), "VALID")
    xf = y.reshape(y.shape[0], -1)
    return xf @ params["wo"].T + params["bo"], xf


if __name__ == "__main__":
    key = jax.random.PRNGKey(0)
    kx, k1, k2, k3, k4, k5, k6 = jax.random.split(key, 7)
    B = 2
    x = jax.random.normal(kx, (B, 1, 28, 28), jnp.float32)
    params = dict(
        w1=0.05 * jax.random.normal(k1, (16, 1, 5, 5), jnp.float32),
        b1=0.05 * jax.random.normal(k2, (16,), jnp.float32),
        w2=0.05 * jax.random.normal(k3, (32, 16, 5, 5), jnp.float32),
        b2=0.05 * jax.random.normal(k4, (32,), jnp.float32),
        wo=0.05 * jax.random.normal(k5, (10, 512), jnp.float32),
        bo=0.05 * jax.random.normal(k6, (10,), jnp.float32),
    )

    out, x_flat = jax.block_until_ready(jax.jit(cnn3_forward)(x, params))

    ref_out, ref_flat = cnn3_reference(x, params)
    assert out.shape == (B, 10) and x_flat.shape == (B, 512)
    assert jnp.allclose(out, ref_out, atol=2e-2, rtol=2e-2)
    assert jnp.allclose(x_flat, ref_flat, atol=2e-2, rtol=2e-2)

    print("KERNEL_OK")
</pallas_src>

<mosaic_0001>
module attributes {stable_mosaic.version = 11 : i64} {
  func.func @_conv_relu_pool_kernel(%arg0: i32, %arg1: memref<2x576x25xbf16, #tpu.memory_space<vmem>>, %arg2: memref<25x16xbf16, #tpu.memory_space<vmem>>, %arg3: memref<1x16xf32, #tpu.memory_space<vmem>>, %arg4: memref<2x144x16xf32, #tpu.memory_space<vmem>>) attributes {dimension_semantics = [#tpu.dimension_semantics<parallel>], iteration_bounds = array<i64: 1>, scalar_prefetch = 0 : i64, scratch_operands = 0 : i64, tpu.core_type = #tpu.core_type<tc>, window_params = [{transform_indices = @transform_0, window_bounds = array<i64: 2, 576, 25>}, {pipeline_mode = #tpu.pipeline_mode<synchronous>, transform_indices = @transform_1, window_bounds = array<i64: 25, 16>}, {pipeline_mode = #tpu.pipeline_mode<synchronous>, transform_indices = @transform_2, window_bounds = array<i64: 1, 16>}, {transform_indices = @transform_3, window_bounds = array<i64: 2, 144, 16>}]} {
    %c0 = arith.constant 0 : index
    %c0_0 = arith.constant 0 : index
    %c0_1 = arith.constant 0 : index
    %0 = vector.load %arg1[%c0, %c0_0, %c0_1] : memref<2x576x25xbf16, #tpu.memory_space<vmem>>, vector<2x576x25xbf16>
    %1 = vector.shape_cast %0 : vector<2x576x25xbf16> to vector<1152x25xbf16>
    %c0_2 = arith.constant 0 : index
    %c0_3 = arith.constant 0 : index
    %2 = vector.load %arg2[%c0_2, %c0_3] : memref<25x16xbf16, #tpu.memory_space<vmem>>, vector<25x16xbf16>
    %cst = arith.constant dense<0.000000e+00> : vector<1152x16xf32>
    %3 = tpu.matmul %1, %2, %cst {dimension_numbers = #tpu.dot_dimension_numbers<[1], [0], [0], [1], [0, 0, 1, 1], [], []>} : vector<1152x25xbf16>, vector<25x16xbf16>, vector<1152x16xf32> -> vector<1152x16xf32>
    %c0_4 = arith.constant 0 : index
    %c0_5 = arith.constant 0 : index
    %4 = vector.load %arg3[%c0_4, %c0_5] : memref<1x16xf32, #tpu.memory_space<vmem>>, vector<1x16xf32>
    %5 = vector.broadcast %4 : vector<1x16xf32> to vector<1152x16xf32>
    %6 = arith.addf %3, %5 : vector<1152x16xf32>
    %cst_6 = arith.constant 0.000000e+00 : f32
    %7 = vector.broadcast %cst_6 : f32 to vector<1152x16xf32>
    %8 = arith.maximumf %6, %7 : vector<1152x16xf32>
    %9 = vector.shape_cast %8 : vector<1152x16xf32> to vector<2x4x144x16xf32>
    %10 = vector.extract_strided_slice %9 {offsets = [0, 0, 0, 0], sizes = [2, 1, 144, 16], strides = [1, 1, 1, 1]} : vector<2x4x144x16xf32> to vector<2x1x144x16xf32>
    %11 = vector.shape_cast %10 : vector<2x1x144x16xf32> to vector<2x144x16xf32>
    %12 = vector.extract_strided_slice %9 {offsets = [0, 1, 0, 0], sizes = [2, 1, 144, 16], strides = [1, 1, 1, 1]} : vector<2x4x144x16xf32> to vector<2x1x144x16xf32>
    %13 = vector.shape_cast %12 : vector<2x1x144x16xf32> to vector<2x144x16xf32>
    %14 = arith.maximumf %11, %13 : vector<2x144x16xf32>
    %15 = vector.extract_strided_slice %9 {offsets = [0, 2, 0, 0], sizes = [2, 1, 144, 16], strides = [1, 1, 1, 1]} : vector<2x4x144x16xf32> to vector<2x1x144x16xf32>
    %16 = vector.shape_cast %15 : vector<2x1x144x16xf32> to vector<2x144x16xf32>
    %17 = vector.extract_strided_slice %9 {offsets = [0, 3, 0, 0], sizes = [2, 1, 144, 16], strides = [1, 1, 1, 1]} : vector<2x4x144x16xf32> to vector<2x1x144x16xf32>
    %18 = vector.shape_cast %17 : vector<2x1x144x16xf32> to vector<2x144x16xf32>
    %19 = arith.maximumf %16, %18 : vector<2x144x16xf32>
    %20 = arith.maximumf %14, %19 : vector<2x144x16xf32>
    %c0_7 = arith.constant 0 : index
    %c0_8 = arith.constant 0 : index
    %c0_9 = arith.constant 0 : index
    %21 = vector.load %arg4[%c0_7, %c0_8, %c0_9] : memref<2x144x16xf32, #tpu.memory_space<vmem>>, vector<2x144x16xf32>
    tpu.vector_store %arg4[%c0_7, %c0_8, %c0_9], %20 {strides = array<i32>} : memref<2x144x16xf32, #tpu.memory_space<vmem>>, vector<2x144x16xf32>,
    return
  }
  func.func @transform_0(%arg0: i32) -> (i32, i32, i32) {
    %c0_i32 = arith.constant 0 : i32
    %c0_i32_0 = arith.constant 0 : i32
    %c0_i32_1 = arith.constant 0 : i32
    return %arg0, %c0_i32, %c0_i32_0 : i32, i32, i32
  }
  func.func @transform_1(%arg0: i32) -> (i32, i32) {
    %c0_i32 = arith.constant 0 : i32
    %c0_i32_0 = arith.constant 0 : i32
    %c0_i32_1 = arith.constant 0 : i32
    return %c0_i32, %c0_i32_0 : i32, i32
  }
  func.func @transform_2(%arg0: i32) -> (i32, i32) {
    %c0_i32 = arith.constant 0 : i32
    %c0_i32_0 = arith.constant 0 : i32
    %c0_i32_1 = arith.constant 0 : i32
    return %c0_i32, %c0_i32_0 : i32, i32
  }
  func.func @transform_3(%arg0: i32) -> (i32, i32, i32) {
    %c0_i32 = arith.constant 0 : i32
    %c0_i32_0 = arith.constant 0 : i32
    %c0_i32_1 = arith.constant 0 : i32
    return %arg0, %c0_i32, %c0_i32_0 : i32, i32, i32
  }
}

module attributes {stable_mosaic.version = 11 : i64} {
  func.func @_conv_relu_pool_kernel(%arg0: i32, %arg1: memref<2x64x400xbf16, #tpu.memory_space<vmem>>, %arg2: memref<400x32xbf16, #tpu.memory_space<vmem>>, %arg3: memref<1x32xf32, #tpu.memory_space<vmem>>, %arg4: memref<2x16x32xf32, #tpu.memory_space<vmem>>) attributes {dimension_semantics = [#tpu.dimension_semantics<parallel>], iteration_bounds = array<i64: 1>, scalar_prefetch = 0 : i64, scratch_operands = 0 : i64, tpu.core_type = #tpu.core_type<tc>, window_params = [{transform_indices = @transform_0, window_bounds = array<i64: 2, 64, 400>}, {pipeline_mode = #tpu.pipeline_mode<synchronous>, transform_indices = @transform_1, window_bounds = array<i64: 400, 32>}, {pipeline_mode = #tpu.pipeline_mode<synchronous>, transform_indices = @transform_2, window_bounds = array<i64: 1, 32>}, {transform_indices = @transform_3, window_bounds = array<i64: 2, 16, 32>}]} {
    %c0 = arith.constant 0 : index
    %c0_0 = arith.constant 0 : index
    %c0_1 = arith.constant 0 : index
    %0 = vector.load %arg1[%c0, %c0_0, %c0_1] : memref<2x64x400xbf16, #tpu.memory_space<vmem>>, vector<2x64x400xbf16>
    %1 = vector.shape_cast %0 : vector<2x64x400xbf16> to vector<128x400xbf16>
    %c0_2 = arith.constant 0 : index
    %c0_3 = arith.constant 0 : index
    %2 = vector.load %arg2[%c0_2, %c0_3] : memref<400x32xbf16, #tpu.memory_space<vmem>>, vector<400x32xbf16>
    %cst = arith.constant dense<0.000000e+00> : vector<128x32xf32>
    %3 = tpu.matmul %1, %2, %cst {dimension_numbers = #tpu.dot_dimension_numbers<[1], [0], [0], [1], [0, 0, 1, 1], [], []>} : vector<128x400xbf16>, vector<400x32xbf16>, vector<128x32xf32> -> vector<128x32xf32>
    %c0_4 = arith.constant 0 : index
    %c0_5 = arith.constant 0 : index
    %4 = vector.load %arg3[%c0_4, %c0_5] : memref<1x32xf32, #tpu.memory_space<vmem>>, vector<1x32xf32>
    %5 = vector.broadcast %4 : vector<1x32xf32> to vector<128x32xf32>
    %6 = arith.addf %3, %5 : vector<128x32xf32>
    %cst_6 = arith.constant 0.000000e+00 : f32
    %7 = vector.broadcast %cst_6 : f32 to vector<128x32xf32>
    %8 = arith.maximumf %6, %7 : vector<128x32xf32>
    %9 = vector.shape_cast %8 : vector<128x32xf32> to vector<2x4x16x32xf32>
    %10 = vector.extract_strided_slice %9 {offsets = [0, 0, 0, 0], sizes = [2, 1, 16, 32], strides = [1, 1, 1, 1]} : vector<2x4x16x32xf32> to vector<2x1x16x32xf32>
    %11 = vector.shape_cast %10 : vector<2x1x16x32xf32> to vector<2x16x32xf32>
    %12 = vector.extract_strided_slice %9 {offsets = [0, 1, 0, 0], sizes = [2, 1, 16, 32], strides = [1, 1, 1, 1]} : vector<2x4x16x32xf32> to vector<2x1x16x32xf32>
    %13 = vector.shape_cast %12 : vector<2x1x16x32xf32> to vector<2x16x32xf32>
    %14 = arith.maximumf %11, %13 : vector<2x16x32xf32>
    %15 = vector.extract_strided_slice %9 {offsets = [0, 2, 0, 0], sizes = [2, 1, 16, 32], strides = [1, 1, 1, 1]} : vector<2x4x16x32xf32> to vector<2x1x16x32xf32>
    %16 = vector.shape_cast %15 : vector<2x1x16x32xf32> to vector<2x16x32xf32>
    %17 = vector.extract_strided_slice %9 {offsets = [0, 3, 0, 0], sizes = [2, 1, 16, 32], strides = [1, 1, 1, 1]} : vector<2x4x16x32xf32> to vector<2x1x16x32xf32>
    %18 = vector.shape_cast %17 : vector<2x1x16x32xf32> to vector<2x16x32xf32>
    %19 = arith.maximumf %16, %18 : vector<2x16x32xf32>
    %20 = arith.maximumf %14, %19 : vector<2x16x32xf32>
    %c0_7 = arith.constant 0 : index
    %c0_8 = arith.constant 0 : index
    %c0_9 = arith.constant 0 : index
    %21 = vector.load %arg4[%c0_7, %c0_8, %c0_9] : memref<2x16x32xf32, #tpu.memory_space<vmem>>, vector<2x16x32xf32>
    tpu.vector_store %arg4[%c0_7, %c0_8, %c0_9], %20 {strides = array<i32>} : memref<2x16x32xf32, #tpu.memory_space<vmem>>, vector<2x16x32xf32>,
    return
  }
  func.func @transform_0(%arg0: i32) -> (i32, i32, i32) {
    %c0_i32 = arith.constant 0 : i32
    %c0_i32_0 = arith.constant 0 : i32
    %c0_i32_1 = arith.constant 0 : i32
    return %arg0, %c0_i32, %c0_i32_0 : i32, i32, i32
  }
  func.func @transform_1(%arg0: i32) -> (i32, i32) {
    %c0_i32 = arith.constant 0 : i32
    %c0_i32_0 = arith.constant 0 : i32
    %c0_i32_1 = arith.constant 0 : i32
    return %c0_i32, %c0_i32_0 : i32, i32
  }
  func.func @transform_2(%arg0: i32) -> (i32, i32) {
    %c0_i32 = arith.constant 0 : i32
    %c0_i32_0 = arith.constant 0 : i32
    %c0_i32_1 = arith.constant 0 : i32
    return %c0_i32, %c0_i32_0 : i32, i32
  }
  func.func @transform_3(%arg0: i32) -> (i32, i32, i32) {
    %c0_i32 = arith.constant 0 : i32
    %c0_i32_0 = arith.constant 0 : i32
    %c0_i32_1 = arith.constant 0 : i32
    return %arg0, %c0_i32, %c0_i32_0 : i32, i32, i32
  }
}

module attributes {stable_mosaic.version = 11 : i64} {
  func.func @_linear_kernel(%arg0: i32, %arg1: memref<2x512xf32, #tpu.memory_space<vmem>>, %arg2: memref<512x128xf32, #tpu.memory_space<vmem>>, %arg3: memref<1x128xf32, #tpu.memory_space<vmem>>, %arg4: memref<2x128xf32, #tpu.memory_space<vmem>>) attributes {dimension_semantics = [#tpu.dimension_semantics<parallel>], iteration_bounds = array<i64: 1>, scalar_prefetch = 0 : i64, scratch_operands = 0 : i64, tpu.core_type = #tpu.core_type<tc>, window_params = [{transform_indices = @transform_0, window_bounds = array<i64: 2, 512>}, {pipeline_mode = #tpu.pipeline_mode<synchronous>, transform_indices = @transform_1, window_bounds = array<i64: 512, 128>}, {pipeline_mode = #tpu.pipeline_mode<synchronous>, transform_indices = @transform_2, window_bounds = array<i64: 1, 128>}, {transform_indices = @transform_3, window_bounds = array<i64: 2, 128>}]} {
    %c0 = arith.constant 0 : index
    %c0_0 = arith.constant 0 : index
    %0 = vector.load %arg1[%c0, %c0_0] : memref<2x512xf32, #tpu.memory_space<vmem>>, vector<2x512xf32>
    %c0_1 = arith.constant 0 : index
    %c0_2 = arith.constant 0 : index
    %1 = vector.load %arg2[%c0_1, %c0_2] : memref<512x128xf32, #tpu.memory_space<vmem>>, vector<512x128xf32>
    %cst = arith.constant dense<0.000000e+00> : vector<2x128xf32>
    %2 = tpu.matmul %0, %1, %cst {dimension_numbers = #tpu.dot_dimension_numbers<[1], [0], [0], [1], [0, 0, 1, 1], [], []>} : vector<2x512xf32>, vector<512x128xf32>, vector<2x128xf32> -> vector<2x128xf32>
    %c0_3 = arith.constant 0 : index
    %c0_4 = arith.constant 0 : index
    %3 = vector.load %arg3[%c0_3, %c0_4] : memref<1x128xf32, #tpu.memory_space<vmem>>, vector<1x128xf32>
    %4 = vector.broadcast %3 : vector<1x128xf32> to vector<2x128xf32>
    %5 = arith.addf %2, %4 : vector<2x128xf32>
    %c0_5 = arith.constant 0 : index
    %c0_6 = arith.constant 0 : index
    %6 = vector.load %arg4[%c0_5, %c0_6] : memref<2x128xf32, #tpu.memory_space<vmem>>, vector<2x128xf32>
    tpu.vector_store %arg4[%c0_5, %c0_6], %5 {strides = array<i32>} : memref<2x128xf32, #tpu.memory_space<vmem>>, vector<2x128xf32>,
    return
  }
  func.func @transform_0(%arg0: i32) -> (i32, i32) {
    %c0_i32 = arith.constant 0 : i32
    %c0_i32_0 = arith.constant 0 : i32
    return %arg0, %c0_i32 : i32, i32
  }
  func.func @transform_1(%arg0: i32) -> (i32, i32) {
    %c0_i32 = arith.constant 0 : i32
    %c0_i32_0 = arith.constant 0 : i32
    %c0_i32_1 = arith.constant 0 : i32
    return %c0_i32, %c0_i32_0 : i32, i32
  }
  func.func @transform_2(%arg0: i32) -> (i32, i32) {
    %c0_i32 = arith.constant 0 : i32
    %c0_i32_0 = arith.constant 0 : i32
    %c0_i32_1 = arith.constant 0 : i32
    return %c0_i32, %c0_i32_0 : i32, i32
  }
  func.func @transform_3(%arg0: i32) -> (i32, i32) {
    %c0_i32 = arith.constant 0 : i32
    %c0_i32_0 = arith.constant 0 : i32
    return %arg0, %c0_i32 : i32, i32
  }
}

</mosaic_0001>

<bundles_post_ra>
// kernel: cnn3_forward.3
= control target key start
LH: loop header
LB: loop body
LE: loop exit
PB: predicated region body
PF: predicated region fallthrough
CT: control target
= control target key end

     0   :  { %vm758_vm0 = vcmask 1043456   ;;  %vm759_vm1 = vcmask 1044480   ;;  %v2116_v1 = vmov 65535   ;;  %vm541_vm2 = vcmask 203776   ;;  %s3145_s1 = inlined_call_operand.vmem [shape: bf16[25,16], index: 1, kind: input, shape index: {}]   ;;  %s3146_s0 = inlined_call_operand.vmem [shape: bf16[2,576,25], index: 0, kind: input, shape index: {}]   ;;  %s3147_s2 = inlined_call_operand.vmem [shape: f32[1,16], index: 2, kind: input, shape index: {}]   ;;  %s3148_s3 = inlined_call_operand.vmem [shape: f32[2,144,16], index: 3, kind: output, shape index: {}]  }
   0x1   :  { %v2041_v0 = vld [vmem:[%s3145_s1 + $0x8] sm:$0x1f]   ;;  %v760_v2 = vsel %vm758_vm0, 4294967295, %v2116_v1  ;;  %v2043_v4 = vld [vmem:[%s3146_s0] sm:$0xff]   ;;  %v2047_v10 = vld [vmem:[%s3146_s0 + $0x10] sm:$0xff]   ;;  %vm1626_vm3 = vcmask 130048  }
   0x2   :  { %v761_v3 = vsel %vm759_vm1, %v760_v2, 0  ;;  %v2042_v6 = vld [vmem:[%s3145_s1] sm:$0xff]   ;;  %1892 = vmatprep.mubr.msk.bf16.mxu0 %vm541_vm2, %v2043_v4  ;;  %v2045_v8 = vld [vmem:[%s3146_s0 + $0x8] sm:$0xff]   ;;  %v2048_v11 = vld [vmem:[%s3146_s0 + $0x130] sm:$0xff]  }
   0x3   :  { %v763_v5 = vand.u32 %v2041_v0, %v761_v3  ;;  %v2044_v7 = vld [vmem:[%s3146_s0 + $0x120] sm:$0xff]   ;;  %v2046_v9 = vld [vmem:[%s3146_s0 + $0x128] sm:$0xff]   ;;  %v2049_v12 = vld [vmem:[%s3146_s0 + $0x18] sm:$0xff]  }
   0x4   :  { %1964 = vmatprep.mubr.msk.bf16.mxu1 %vm541_vm2, %v2044_v7  ;;  %v2050_v13 = vld [vmem:[%s3146_s0 + $0x138] sm:$0xff]   ;;  %v2051_v14 = vld [vmem:[%s3146_s0 + $0x20] sm:$0xff]   ;;  %v2053_v16 = vld [vmem:[%s3146_s0 + $0x28] sm:$0xff]  }
   0x5   :  { %1888 = vmatprep.subr.bf16.mxu0 %v763_v5  ;;  %2036 = vmatprep.subr.bf16.mxu1 %v763_v5  ;;  %v2052_v15 = vld [vmem:[%s3146_s0 + $0x140] sm:$0xff]   ;;  %v2054_v17 = vld [vmem:[%s3146_s0 + $0x148] sm:$0xff]   ;;  %v2055_v18 = vld [vmem:[%s3146_s0 + $0x30] sm:$0xff]  }
   0x6   :  { %1889 = vmatpush3.bf16.msra.mxu0 %v763_v5  ;;  %2038 = vmatpush3.bf16.msra.mxu1 %v763_v5  ;;  %v2056_v19 = vld [vmem:[%s3146_s0 + $0x150] sm:$0xff]   ;;  %v2057_v20 = vld [vmem:[%s3146_s0 + $0x38] sm:$0xff]   ;;  %v2059_v22 = vld [vmem:[%s3146_s0 + $0x40] sm:$0xff]  }
   0x7   :  { %1890 = vmatprep.subr.bf16.mxu0 %v2042_v6  ;;  %2037 = vmatprep.subr.bf16.mxu1 %v2042_v6  ;;  %v2058_v21 = vld [vmem:[%s3146_s0 + $0x158] sm:$0xff]   ;;  %v2060_v23 = vld [vmem:[%s3146_s0 + $0x160] sm:$0xff]   ;;  %v2061_v24 = vld [vmem:[%s3146_s0 + $0x48] sm:$0xff]  }
   0x8   :  { %v2062_v25 = vld [vmem:[%s3146_s0 + $0x168] sm:$0xff]   ;;  %v2063_v26 = vld [vmem:[%s3146_s0 + $0x50] sm:$0xff]   ;;  %v2065_v28 = vld [vmem:[%s3146_s0 + $0x58] sm:$0xff]  }
   0x9   :  { %v2064_v27 = vld [vmem:[%s3146_s0 + $0x170] sm:$0xff]   ;;  %v2066_v29 = vld [vmem:[%s3146_s0 + $0x178] sm:$0xff]   ;;  %v2067_v30 = vld [vmem:[%s3146_s0 + $0x60] sm:$0xff]  }
   0xa   :  { %1891 = vmatpush3.bf16.msra.mxu0 %v2042_v6  ;;  %2039 = vmatpush3.bf16.msra.mxu1 %v2042_v6  ;;  %v2068_v31 = vld [vmem:[%s3146_s0 + $0x180] sm:$0xff]   ;;  %v2069_v32 = vld [vmem:[%s3146_s0 + $0x68] sm:$0xff]   ;;  %v2071_v34 = vld [vmem:[%s3146_s0 + $0x70] sm:$0xff]  }
   0xb   :  { %v2070_v33 = vld [vmem:[%s3146_s0 + $0x188] sm:$0xff]   ;;  %v2072_v35 = vld [vmem:[%s3146_s0 + $0x190] sm:$0xff]   ;;  %v2073_v36 = vld [vmem:[%s3146_s0 + $0x78] sm:$0xff]  }
   0xc   :  { %v2074_v37 = vld [vmem:[%s3146_s0 + $0x198] sm:$0xff]   ;;  %v2075_v38 = vld [vmem:[%s3146_s0 + $0x80] sm:$0xff]   ;;  %v2077_v40 = vld [vmem:[%s3146_s0 + $0x88] sm:$0xff]  }
   0xd   :  { %1893 = vmatmul.mubr.msk.bf16.vlgmr.msra.gmra.mxu0 %vm541_vm2, %v2045_v8  ;;  %1965 = vmatmul.mubr.msk.bf16.vlgmr.msra.gmra.mxu1 %vm541_vm2, %v2046_v9  ;;  %v2076_v39 = vld [vmem:[%s3146_s0 + $0x1a0] sm:$0xff]   ;;  %v2078_v41 = vld [vmem:[%s3146_s0 + $0x1a8] sm:$0xff]   ;;  %v2079_v42 = vld [vmem:[%s3146_s0 + $0x90] sm:$0xff]  }
   0xe   :  { %1896 = vmatprep.mubr.msk.bf16.mxu0 %vm541_vm2, %v2047_v10  ;;  %1968 = vmatprep.mubr.msk.bf16.mxu1 %vm541_vm2, %v2048_v11  ;;  %v2080_v43 = vld [vmem:[%s3146_s0 + $0x1b0] sm:$0xff]   ;;  %v2081_v44 = vld [vmem:[%s3146_s0 + $0x98] sm:$0xff]   ;;  %v2083_v46 = vld [vmem:[%s3146_s0 + $0xa0] sm:$0xff]  }
   0xf   :  { %v2082_v45 = vld [vmem:[%s3146_s0 + $0x1b8] sm:$0xff]   ;;  %v2084_v47 = vld [vmem:[%s3146_s0 + $0x1c0] sm:$0xff]   ;;  %v2085_v48 = vld [vmem:[%s3146_s0 + $0xa8] sm:$0xff]  }
  0x10   :  { %v2086_v49 = vld [vmem:[%s3146_s0 + $0x1c8] sm:$0xff]   ;;  %v2087_v50 = vld [vmem:[%s3146_s0 + $0xb0] sm:$0xff]   ;;  %v2089_v52 = vld [vmem:[%s3146_s0 + $0xb8] sm:$0xff]  }
  0x11   :  { %v2088_v51 = vld [vmem:[%s3146_s0 + $0x1d0] sm:$0xff]   ;;  %v2090_v53 = vld [vmem:[%s3146_s0 + $0x1d8] sm:$0xff]   ;;  %v2091_v54 = vld [vmem:[%s3146_s0 + $0xc0] sm:$0xff]  }
  0x12   :  { %v2092_v55 = vld [vmem:[%s3146_s0 + $0x1e0] sm:$0xff]   ;;  %v2093_v56 = vld [vmem:[%s3146_s0 + $0xc8] sm:$0xff]   ;;  %v2095_v58 = vld [vmem:[%s3146_s0 + $0xd0] sm:$0xff]  }
  0x13   :  { %v2094_v57 = vld [vmem:[%s3146_s0 + $0x1e8] sm:$0xff]   ;;  %v2096_v59 = vld [vmem:[%s3146_s0 + $0x1f0] sm:$0xff]   ;;  %v2097_v60 = vld [vmem:[%s3146_s0 + $0xd8] sm:$0xff]  }
  0x14   :  { %v2098_v61 = vld [vmem:[%s3146_s0 + $0x1f8] sm:$0xff]   ;;  %v2099_v62 = vld [vmem:[%s3146_s0 + $0xe0] sm:$0xff]   ;;  %v2101_v0 = vld [vmem:[%s3146_s0 + $0xe8] sm:$0xff]  }
  0x15   :  { %1897 = vmatmul.mubr.msk.bf16.gmra.mxu0 %vm541_vm2, %v2049_v12  ;;  %1969 = vmatmul.mubr.msk.bf16.gmra.mxu1 %vm541_vm2, %v2050_v13  ;;  %v2100_v63 = vld [vmem:[%s3146_s0 + $0x200] sm:$0xff]   ;;  %v2102_v1 = vld [vmem:[%s3146_s0 + $0x208] sm:$0xff]   ;;  %v2103_v2 = vld [vmem:[%s3146_s0 + $0xf0] sm:$0xff]  }
  0x16   :  { %1900 = vmatprep.mubr.msk.bf16.mxu0 %vm541_vm2, %v2051_v14  ;;  %1972 = vmatprep.mubr.msk.bf16.mxu1 %vm541_vm2, %v2052_v15  ;;  %v2104_v3 = vld [vmem:[%s3146_s0 + $0x210] sm:$0xff]   ;;  %v2105_v4 = vld [vmem:[%s3146_s0 + $0xf8] sm:$0xff]   ;;  %v2107_v6 = vld [vmem:[%s3146_s0 + $0x100] sm:$0xff]  }
  0x17   :  { %v2106_v5 = vld [vmem:[%s3146_s0 + $0x218] sm:$0xff]   ;;  %v2108_v7 = vld [vmem:[%s3146_s0 + $0x220] sm:$0xff]   ;;  %v2109_v8 = vld [vmem:[%s3146_s0 + $0x108] sm:$0xff]  }
  0x18   :  { %v2110_v9 = vld [vmem:[%s3146_s0 + $0x228] sm:$0xff]   ;;  %v2111_v10 = vld [vmem:[%s3146_s0 + $0x110] sm:$0xff]   ;;  %v2113_v12 = vld [vmem:[%s3146_s0 + $0x118] sm:$0xff]  }
  0x19   :  { %v2112_v11 = vld [vmem:[%s3146_s0 + $0x230] sm:$0xff]   ;;  %v2114_v13 = vld [vmem:[%s3146_s0 + $0x238] sm:$0xff]  }
  0x1d   :  { %1901 = vmatmul.mubr.msk.bf16.gmra.mxu0 %vm541_vm2, %v2053_v16  ;;  %1973 = vmatmul.mubr.msk.bf16.gmra.mxu1 %vm541_vm2, %v2054_v17 }
  0x1e   :  { %1904 = vmatprep.mubr.msk.bf16.mxu0 %vm541_vm2, %v2055_v18  ;;  %1976 = vmatprep.mubr.msk.bf16.mxu1 %vm541_vm2, %v2056_v19 }
  0x25   :  { %1905 = vmatmul.mubr.msk.bf16.gmra.mxu0 %vm541_vm2, %v2057_v20  ;;  %1977 = vmatmul.mubr.msk.bf16.gmra.mxu1 %vm541_vm2, %v2058_v21 }
  0x26   :  { %1908 = vmatprep.mubr.msk.bf16.mxu0 %vm541_vm2, %v2059_v22  ;;  %1980 = vmatprep.mubr.msk.bf16.mxu1 %vm541_vm2, %v2060_v23 }
  0x2d   :  { %1909 = vmatmul.mubr.msk.bf16.gmra.mxu0 %vm541_vm2, %v2061_v24  ;;  %1981 = vmatmul.mubr.msk.bf16.gmra.mxu1 %vm541_vm2, %v2062_v25 }
  0x2e   :  { %1912 = vmatprep.mubr.msk.bf16.mxu0 %vm541_vm2, %v2063_v26  ;;  %1984 = vmatprep.mubr.msk.bf16.mxu1 %vm541_vm2, %v2064_v27 }
  0x35   :  { %1913 = vmatmul.mubr.msk.bf16.gmra.mxu0 %vm541_vm2, %v2065_v28  ;;  %1985 = vmatmul.mubr.msk.bf16.gmra.mxu1 %vm541_vm2, %v2066_v29 }
  0x36   :  { %1916 = vmatprep.mubr.msk.bf16.mxu0 %vm541_vm2, %v2067_v30  ;;  %1988 = vmatprep.mubr.msk.bf16.mxu1 %vm541_vm2, %v2068_v31 }
  0x3d   :  { %1917 = vmatmul.mubr.msk.bf16.gmra.mxu0 %vm541_vm2, %v2069_v32  ;;  %1989 = vmatmul.mubr.msk.bf16.gmra.mxu1 %vm541_vm2, %v2070_v33 }
  0x3e   :  { %1920 = vmatprep.mubr.msk.bf16.mxu0 %vm541_vm2, %v2071_v34  ;;  %1992 = vmatprep.mubr.msk.bf16.mxu1 %vm541_vm2, %v2072_v35 }
  0x45   :  { %1921 = vmatmul.mubr.msk.bf16.gmra.mxu0 %vm541_vm2, %v2073_v36  ;;  %1993 = vmatmul.mubr.msk.bf16.gmra.mxu1 %vm541_vm2, %v2074_v37 }
  0x46   :  { %1924 = vmatprep.mubr.msk.bf16.mxu0 %vm541_vm2, %v2075_v38  ;;  %1996 = vmatprep.mubr.msk.bf16.mxu1 %vm541_vm2, %v2076_v39  ;;  %v2446_v38 = vld [vmem:[%s3147_s2] ss:$0 sm:$0xff] }
  0x4d   :  { %1925 = vmatmul.mubr.msk.bf16.gmra.mxu0 %vm541_vm2, %v2077_v40  ;;  %1997 = vmatmul.mubr.msk.bf16.gmra.mxu1 %vm541_vm2, %v2078_v41 }
  0x4e   :  { %1928 = vmatprep.mubr.msk.bf16.mxu0 %vm541_vm2, %v2079_v42  ;;  %2000 = vmatprep.mubr.msk.bf16.mxu1 %vm541_vm2, %v2080_v43 }
  0x55   :  { %1929 = vmatmul.mubr.msk.bf16.gmra.mxu0 %vm541_vm2, %v2081_v44  ;;  %2001 = vmatmul.mubr.msk.bf16.gmra.mxu1 %vm541_vm2, %v2082_v45 }
  0x56   :  { %1932 = vmatprep.mubr.msk.bf16.mxu0 %vm541_vm2, %v2083_v46  ;;  %2004 = vmatprep.mubr.msk.bf16.mxu1 %vm541_vm2, %v2084_v47 }
  0x5d   :  { %1933 = vmatmul.mubr.msk.bf16.gmra.mxu0 %vm541_vm2, %v2085_v48  ;;  %2005 = vmatmul.mubr.msk.bf16.gmra.mxu1 %vm541_vm2, %v2086_v49 }
  0x5e   :  { %1936 = vmatprep.mubr.msk.bf16.mxu0 %vm541_vm2, %v2087_v50  ;;  %2008 = vmatprep.mubr.msk.bf16.mxu1 %vm541_vm2, %v2088_v51 }
  0x65   :  { %1937 = vmatmul.mubr.msk.bf16.gmra.mxu0 %vm541_vm2, %v2089_v52  ;;  %2009 = vmatmul.mubr.msk.bf16.gmra.mxu1 %vm541_vm2, %v2090_v53 }
  0x66   :  { %1940 = vmatprep.mubr.msk.bf16.mxu0 %vm541_vm2, %v2091_v54  ;;  %2012 = vmatprep.mubr.msk.bf16.mxu1 %vm541_vm2, %v2092_v55 }
  0x6d   :  { %1941 = vmatmul.mubr.msk.bf16.gmra.mxu0 %vm541_vm2, %v2093_v56  ;;  %2013 = vmatmul.mubr.msk.bf16.gmra.mxu1 %vm541_vm2, %v2094_v57 }
  0x6e   :  { %1944 = vmatprep.mubr.msk.bf16.mxu0 %vm541_vm2, %v2095_v58  ;;  %2016 = vmatprep.mubr.msk.bf16.mxu1 %vm541_vm2, %v2096_v59 }
  0x75   :  { %1945 = vmatmul.mubr.msk.bf16.gmra.mxu0 %vm541_vm2, %v2097_v60  ;;  %2017 = vmatmul.mubr.msk.bf16.gmra.mxu1 %vm541_vm2, %v2098_v61 }
  0x76   :  { %1948 = vmatprep.mubr.msk.bf16.mxu0 %vm541_vm2, %v2099_v62  ;;  %2020 = vmatprep.mubr.msk.bf16.mxu1 %vm541_vm2, %v2100_v63 }
  0x7d   :  { %1949 = vmatmul.mubr.msk.bf16.gmra.mxu0 %vm541_vm2, %v2101_v0  ;;  %2021 = vmatmul.mubr.msk.bf16.gmra.mxu1 %vm541_vm2, %v2102_v1 }
  0x7e   :  { %1952 = vmatprep.mubr.msk.bf16.mxu0 %vm541_vm2, %v2103_v2  ;;  %2024 = vmatprep.mubr.msk.bf16.mxu1 %vm541_vm2, %v2104_v3 }
  0x85   :  { %1953 = vmatmul.mubr.msk.bf16.gmra.mxu0 %vm541_vm2, %v2105_v4  ;;  %2025 = vmatmul.mubr.msk.bf16.gmra.mxu1 %vm541_vm2, %v2106_v5 }
  0x86   :  { %1956 = vmatprep.mubr.msk.bf16.mxu0 %vm541_vm2, %v2107_v6  ;;  %2028 = vmatprep.mubr.msk.bf16.mxu1 %vm541_vm2, %v2108_v7 }
  0x8d   :  { %1957 = vmatmul.mubr.msk.bf16.gmra.mxu0 %vm541_vm2, %v2109_v8  ;;  %2029 = vmatmul.mubr.msk.bf16.gmra.mxu1 %vm541_vm2, %v2110_v9 }
  0x8e   :  { %1960 = vmatprep.mubr.msk.bf16.mxu0 %vm541_vm2, %v2111_v10  ;;  %2032 = vmatprep.mubr.msk.bf16.mxu1 %vm541_vm2, %v2112_v11 }
  0x95   :  { %1961 = vmatmul.mubr.msk.bf16.gmra.mxu0 %vm541_vm2, %v2113_v12  ;;  %2033 = vmatmul.mubr.msk.bf16.gmra.mxu1 %vm541_vm2, %v2114_v13 }
  0xcd   :  { %v1894_v14 = vpop.f32.mrf.mxu0  ;;  %v1966_v15 = vpop.f32.mrf.mxu1 }
  0xce   :  { %v2457_v43 = vadd.f32 %v1894_v14, %v2446_v38  ;;  %v2460_v44 = vadd.f32 %v1966_v15, %v2446_v38 }
  0xcf   :  { %v799_v16 = vpop.f32.mrf.mxu0  ;;  %v1087_v17 = vpop.f32.mrf.mxu1 }
  0xd0   :  { %v800_v47 = vadd.f32 %v2446_v38, %v799_v16  ;;  %v1088_v48 = vadd.f32 %v2446_v38, %v1087_v17  ;;  %v1376_v55 = vmax.f32 %v2457_v43, 0.0  ;;  %v1448_v56 = vmax.f32 %v2460_v44, 0.0 }
  0xd1   :  { %v1895_v18 = vpop.f32.mrf.mxu0  ;;  %v1967_v19 = vpop.f32.mrf.mxu1 }
  0xd2   :  { %v2469_v49 = vadd.f32 %v1895_v18, %v2446_v38  ;;  %v2472_v50 = vadd.f32 %v1967_v19, %v2446_v38  ;;  %v1374_v63 = vmax.f32 %v800_v47, 0.0  ;;  %v1446_v0 = vmax.f32 %v1088_v48, 0.0 }
  0xd3   :  { %v802_v20 = vpop.f32.mrf.mxu0  ;;  %v1090_v21 = vpop.f32.mrf.mxu1 }
  0xd4   :  { %v803_v51 = vadd.f32 %v2446_v38, %v802_v20  ;;  %v1091_v52 = vadd.f32 %v2446_v38, %v1090_v21  ;;  %v1377_v3 = vmax.f32 %v2469_v49, 0.0  ;;  %v1449_v4 = vmax.f32 %v2472_v50, 0.0 }
  0xd5   :  { %v1898_v22 = vpop.f32.mrf.mxu0  ;;  %v1970_v23 = vpop.f32.mrf.mxu1 }
  0xd6   :  { %v2483_v57 = vadd.f32 %v1898_v22, %v2446_v38  ;;  %v2486_v58 = vadd.f32 %v1970_v23, %v2446_v38  ;;  %v1375_v5 = vmax.f32 %v803_v51, 0.0  ;;  %v1447_v6 = vmax.f32 %v1091_v52, 0.0 }
  0xd7   :  { %v815_v24 = vpop.f32.mrf.mxu0  ;;  %v1103_v25 = vpop.f32.mrf.mxu1 }
  0xd8   :  { %v2489_v59 = vadd.f32 %v2446_v38, %v815_v24  ;;  %v2492_v60 = vadd.f32 %v2446_v38, %v1103_v25  ;;  %v1380_v13 = vmax.f32 %v2483_v57, 0.0  ;;  %v1452_v14 = vmax.f32 %v2486_v58, 0.0 }
  0xd9   :  { %v1899_v26 = vpop.f32.mrf.mxu0  ;;  %v1971_v27 = vpop.f32.mrf.mxu1 }
  0xda   :  { %v2503_v9 = vadd.f32 %v1899_v26, %v2446_v38  ;;  %v2506_v10 = vadd.f32 %v1971_v27, %v2446_v38  ;;  %v1378_v15 = vmax.f32 %v2489_v59, 0.0  ;;  %v1450_v16 = vmax.f32 %v2492_v60, 0.0 }
  0xdb   :  { %v818_v28 = vpop.f32.mrf.mxu0  ;;  %v1106_v29 = vpop.f32.mrf.mxu1 }
  0xdc   :  { %v2513_v19 = vadd.f32 %v2446_v38, %v818_v28  ;;  %v2516_v20 = vadd.f32 %v2446_v38, %v1106_v29  ;;  %v1381_v29 = vmax.f32 %v2503_v9, 0.0  ;;  %v1453_v47 = vmax.f32 %v2506_v10, 0.0 }
  0xdd   :  { %v1902_v30 = vpop.f32.mrf.mxu0  ;;  %v1974_v31 = vpop.f32.mrf.mxu1 }
  0xde   :  { %v2523_v23 = vadd.f32 %v1902_v30, %v2446_v38  ;;  %v2526_v24 = vadd.f32 %v1974_v31, %v2446_v38 }
  0xdf   :  { %v2431_v32 = vpop.f32.mrf.mxu0  ;;  %v2433_v33 = vpop.f32.mrf.mxu1 }
  0xe0   :  { %v2538_v48 = vadd.f32 %v2446_v38, %v2431_v32  ;;  %v2542_v30 = vadd.f32 %v2446_v38, %v2433_v33  ;;  %v1451_v32 = vmax.f32 %v2516_v20, 0.0 }
  0xe1   :  { %v2435_v34 = vpop.f32.mrf.mxu0  ;;  %v2437_v35 = vpop.f32.mrf.mxu1 }
  0xe2   :  { %v2546_v31 = vadd.f32 %v2435_v34, %v2446_v38  ;;  %v2550_v51 = vadd.f32 %v2437_v35, %v2446_v38  ;;  %v1456_v34 = vmax.f32 %v2526_v24, 0.0  ;;  %v1382_v20 = vmax.f32 %v2538_v48, 0.0 }
  0xe3   :  { %v2439_v36 = vpop.f32.mrf.mxu0  ;;  %v2441_v37 = vpop.f32.mrf.mxu1 }
  0xe4   :  { %v1123_v48 = vadd.f32 %v2446_v38, %v2441_v37 }
  0xe5   :  { %v2448_v39 = vpop.f32.mrf.mxu0  ;;  %v2450_v40 = vpop.f32.mrf.mxu1 }
  0xe6   :  { %v2590_v37 = vadd.f32 %v2448_v39, %v2446_v38 }
  0xe7   :  { %v2452_v41 = vpop.f32.mrf.mxu0  ;;  %v2454_v42 = vpop.f32.mrf.mxu1 }
  0xe9   :  { %v2462_v45 = vpop.f32.mrf.mxu0  ;;  %v2464_v46 = vpop.f32.mrf.mxu1 }
  0xeb   :  { %v2476_v53 = vpop.f32.mrf.mxu0  ;;  %v2478_v54 = vpop.f32.mrf.mxu1 }
  0xed   :  { %v1910_v61 = vpop.f32.mrf.mxu0  ;;  %v1982_v62 = vpop.f32.mrf.mxu1 }
  0xee   :  { %v872_v1 = vadd.f32 %v1910_v61, %v2446_v38  ;;  %v1160_v2 = vadd.f32 %v1982_v62, %v2446_v38  ;;  %v1379_v62 = vmax.f32 %v2513_v19, 0.0 }
  0xef   :  { %v2498_v7 = vpop.f32.mrf.mxu0  ;;  %v2500_v8 = vpop.f32.mrf.mxu1 }
  0xf0   :  { %v1392_v11 = vmax.f32 %v872_v1, 0.0  ;;  %v1464_v12 = vmax.f32 %v1160_v2, 0.0  ;;  %v864_v10 = vadd.f32 %v2446_v38, %v2498_v7  ;;  %v859_v7 = vadd.f32 %v2462_v45, %v2446_v38 }
  0xf1   :  { %v1911_v17 = vpop.f32.mrf.mxu0  ;;  %v1983_v18 = vpop.f32.mrf.mxu1 }
  0xf2   :  { %v2518_v21 = vmax.f32 %v1374_v63, %v1392_v11  ;;  %v2520_v22 = vmax.f32 %v1446_v0, %v1464_v12  ;;  %v875_v25 = vadd.f32 %v1911_v17, %v2446_v38  ;;  %v1163_v26 = vadd.f32 %v1983_v18, %v2446_v38 }
  0xf3   :  { %v2530_v27 = vpop.f32.mrf.mxu0  ;;  %v2532_v28 = vpop.f32.mrf.mxu1  ;;  %v1384_v0 = vmax.f32 %v2523_v23, 0.0 }
  0xf4   :  { %v1393_v52 = vmax.f32 %v875_v25, 0.0  ;;  %v1465_v59 = vmax.f32 %v1163_v26, 0.0  ;;  %v1454_v25 = vmax.f32 %v2542_v30, 0.0 }
  0xf5   :  { %v1914_v60 = vpop.f32.mrf.mxu0  ;;  %v1986_v61 = vpop.f32.mrf.mxu1 }
  0xf6   :  { %v888_v63 = vadd.f32 %v1914_v60, %v2446_v38  ;;  %v1176_v33 = vadd.f32 %v1986_v61, %v2446_v38  ;;  %v2558_v1 = vmax.f32 %v1375_v5, %v1393_v52  ;;  %v2560_v35 = vmax.f32 %v1447_v6, %v1465_v59 }
  0xf7   :  { %v879_v2 = vpop.f32.mrf.mxu0  ;;  %v1167_v11 = vpop.f32.mrf.mxu1 }
  0xf8   :  { %v1396_v12 = vmax.f32 %v888_v63, 0.0  ;;  %v1468_v17 = vmax.f32 %v1176_v33, 0.0  ;;  %v880_v18 = vadd.f32 %v2446_v38, %v879_v2  ;;  %v1168_v19 = vadd.f32 %v2446_v38, %v1167_v11 }
  0xf9   :  { %v1915_v5 = vpop.f32.mrf.mxu0  ;;  %v1987_v52 = vpop.f32.mrf.mxu1  ;;  %v835_v33 = vadd.f32 %v2446_v38, %v2439_v36 }
  0xfa   :  { %v2568_v6 = vmax.f32 %v1378_v15, %v1396_v12  ;;  %v2570_v59 = vmax.f32 %v1450_v16, %v1468_v17  ;;  %v1394_v61 = vmax.f32 %v880_v18, 0.0  ;;  %v1466_v63 = vmax.f32 %v1168_v19, 0.0 }
  0xfb   :  { %v891_v30 = vadd.f32 %v1915_v5, %v2446_v38  ;;  %v1179_v2 = vadd.f32 %v1987_v52, %v2446_v38  ;;  %v882_v11 = vpop.f32.mrf.mxu0  ;;  %v1170_v60 = vpop.f32.mrf.mxu1  ;;  %v2594_v17 = vadd.f32 %v2450_v40, %v2446_v38 }
  0xfc   :  { %v2580_v15 = vmax.f32 %v1376_v55, %v1394_v61  ;;  %v2584_v16 = vmax.f32 %v1448_v56, %v1466_v63  ;;  %v883_v12 = vadd.f32 %v2446_v38, %v882_v11  ;;  %v1171_v36 = vadd.f32 %v2446_v38, %v1170_v60 }
  0xfd   :  { %v1397_v18 = vmax.f32 %v891_v30, 0.0  ;;  %v1469_v43 = vmax.f32 %v1179_v2, 0.0  ;;  %v1918_v55 = vpop.f32.mrf.mxu0  ;;  %v1990_v19 = vpop.f32.mrf.mxu1  ;;  %v1383_v61 = vmax.f32 %v835_v33, 0.0  ;;  %v1455_v60 = vmax.f32 %v1123_v48, 0.0 }
  0xfe   :  { %v1395_v5 = vmax.f32 %v883_v12, 0.0  ;;  %v1467_v44 = vmax.f32 %v1171_v36, 0.0  ;;  %v904_v56 = vadd.f32 %v1918_v55, %v2446_v38  ;;  %v1192_v52 = vadd.f32 %v1990_v19, %v2446_v38 }
  0xff   :  { %v2598_v63 = vmax.f32 %v1379_v62, %v1397_v18  ;;  %v2600_v39 = vmax.f32 %v1451_v32, %v1469_v43  ;;  %v895_v11 = vpop.f32.mrf.mxu0  ;;  %v1183_v26 = vpop.f32.mrf.mxu1  ;;  %v1388_v36 = vmax.f32 %v2590_v37, 0.0  ;;  %v1460_v33 = vmax.f32 %v2594_v17, 0.0 }
 0x100   :  { %v2604_v40 = vmax.f32 %v1377_v3, %v1395_v5  ;;  %v2608_v30 = vmax.f32 %v1449_v4, %v1467_v44  ;;  %v1400_v2 = vmax.f32 %v904_v56, 0.0  ;;  %v1472_v12 = vmax.f32 %v1192_v52, 0.0 }
 0x101   :  { %v896_v62 = vadd.f32 %v2446_v38, %v895_v11  ;;  %v1184_v32 = vadd.f32 %v2446_v38, %v1183_v26  ;;  %v1919_v48 = vpop.f32.mrf.mxu0  ;;  %v1991_v18 = vpop.f32.mrf.mxu1  ;;  %v848_v4 = vadd.f32 %v2446_v38, %v2452_v41  ;;  %v1136_v55 = vadd.f32 %v2446_v38, %v2454_v42 }
 0x102   :  { %v2614_v43 = vmax.f32 %v1382_v20, %v1400_v2  ;;  %v2616_v49 = vmax.f32 %v1454_v25, %v1472_v12  ;;  %v907_v50 = vadd.f32 %v1919_v48, %v2446_v38  ;;  %v1195_v3 = vadd.f32 %v1991_v18, %v2446_v38 }
 0x103   :  { %v1398_v19 = vmax.f32 %v896_v62, 0.0  ;;  %v1470_v5 = vmax.f32 %v1184_v32, 0.0  ;;  %v898_v44 = vpop.f32.mrf.mxu0  ;;  %v1186_v26 = vpop.f32.mrf.mxu1  ;;  %v851_v11 = vadd.f32 %v2446_v38, %v2476_v53  ;;  %v1139_v2 = vadd.f32 %v2446_v38, %v2478_v54 }
 0x104   :  { %v1401_v56 = vmax.f32 %v907_v50, 0.0  ;;  %v1473_v52 = vmax.f32 %v1195_v3, 0.0  ;;  %v899_v20 = vadd.f32 %v2446_v38, %v898_v44  ;;  %v1187_v25 = vadd.f32 %v2446_v38, %v1186_v26 }
 0x105   :  { %v2632_v41 = vmax.f32 %v1380_v13, %v1398_v19  ;;  %v2636_v42 = vmax.f32 %v1452_v14, %v1470_v5  ;;  %v1922_v12 = vpop.f32.mrf.mxu0  ;;  %v1994_v62 = vpop.f32.mrf.mxu1  ;;  %v1386_v53 = vmax.f32 %v848_v4, 0.0  ;;  %v1458_v3 = vmax.f32 %v1136_v55, 0.0 }
 0x106   :  { %v2638_v32 = vmax.f32 %v1383_v61, %v1401_v56  ;;  %v2640_v48 = vmax.f32 %v1455_v60, %v1473_v52  ;;  %v1399_v18 = vmax.f32 %v899_v20, 0.0  ;;  %v1471_v50 = vmax.f32 %v1187_v25, 0.0 }
 0x107   :  { %v920_v54 = vadd.f32 %v1922_v12, %v2446_v38  ;;  %v1208_v57 = vadd.f32 %v1994_v62, %v2446_v38  ;;  %v911_v13 = vpop.f32.mrf.mxu0  ;;  %v1199_v19 = vpop.f32.mrf.mxu1  ;;  %v1387_v4 = vmax.f32 %v851_v11, 0.0  ;;  %v1459_v55 = vmax.f32 %v1139_v2, 0.0 }
 0x108   :  { %v2646_v58 = vmax.f32 %v1381_v29, %v1399_v18  ;;  %v2650_v14 = vmax.f32 %v1453_v47, %v1471_v50  ;;  %v912_v61 = vadd.f32 %v2446_v38, %v911_v13  ;;  %v1200_v60 = vadd.f32 %v2446_v38, %v1199_v19 }
 0x109   :  { %v1404_v5 = vmax.f32 %v920_v54, 0.0  ;;  %v1476_v44 = vmax.f32 %v1208_v57, 0.0  ;;  %v1923_v26 = vpop.f32.mrf.mxu0  ;;  %v1995_v56 = vpop.f32.mrf.mxu1  ;;  %v1152_v47 = vadd.f32 %v2446_v38, %v2500_v8  ;;  %v1147_v8 = vadd.f32 %v2464_v46, %v2446_v38 }
 0x10a   :  { %3153 = vst [vmem:[#allocation2_spill] sm:$0xff] %v2646_v58  ;;  %3154 = vst [vmem:[#allocation3_spill] sm:$0xff] %v2650_v14  ;;  %v1402_v52 = vmax.f32 %v912_v61, 0.0  ;;  %v1474_v20 = vmax.f32 %v1200_v60, 0.0  ;;  %v923_v9 = vadd.f32 %v1923_v26, %v2446_v38  ;;  %v1211_v29 = vadd.f32 %v1995_v56, %v2446_v38 }
 0x10b   :  { %v2660_v25 = vmax.f32 %v1386_v53, %v1404_v5  ;;  %v2662_v11 = vmax.f32 %v1458_v3, %v1476_v44  ;;  %v914_v2 = vpop.f32.mrf.mxu0  ;;  %v1202_v12 = vpop.f32.mrf.mxu1  ;;  %v1390_v19 = vmax.f32 %v864_v10, 0.0  ;;  %v1462_v61 = vmax.f32 %v1152_v47, 0.0 }
 0x10c   :  { %v2666_v62 = vmax.f32 %v1384_v0, %v1402_v52  ;;  %v2670_v18 = vmax.f32 %v1456_v34, %v1474_v20  ;;  %v1405_v50 = vmax.f32 %v923_v9, 0.0  ;;  %v1477_v54 = vmax.f32 %v1211_v29, 0.0 }
 0x10d   :  { %3155 = vst [vmem:[#allocation4_spill] sm:$0xff] %v2660_v25  ;;  %3156 = vst [vmem:[#allocation5_spill] sm:$0xff] %v2662_v11  ;;  %v915_v53 = vadd.f32 %v2446_v38, %v914_v2  ;;  %v1203_v3 = vadd.f32 %v2446_v38, %v1202_v12  ;;  %v1926_v57 = vpop.f32.mrf.mxu0  ;;  %v1998_v23 = vpop.f32.mrf.mxu1  ;;  %v3161_v20 = vmax.f32 %v2546_v31, 0.0  ;;  %v3163_v29 = vmax.f32 %v2550_v51, 0.0 }
 0x10e   :  { %3157 = vst [vmem:[#allocation6_spill] sm:$0xff] %v2666_v62  ;;  %3158 = vst [vmem:[#allocation7_spill] sm:$0xff] %v2670_v18  ;;  %v2678_v0 = vmax.f32 %v1387_v4, %v1405_v50  ;;  %v2680_v13 = vmax.f32 %v1459_v55, %v1477_v54  ;;  %v936_v24 = vadd.f32 %v1926_v57, %v2446_v38 }
 0x10f   :  { %v1224_v34 = vadd.f32 %v1998_v23, %v2446_v38  ;;  %v1403_v45 = vmax.f32 %v915_v53, 0.0  ;;  %v1475_v60 = vmax.f32 %v1203_v3, 0.0  ;;  %v927_v5 = vpop.f32.mrf.mxu0  ;;  %v1215_v46 = vpop.f32.mrf.mxu1  ;;  %v867_v4 = vadd.f32 %v2446_v38, %v2530_v27 }
 0x110   :  { %3159 = vst [vmem:[#allocation8_spill] sm:$0xff] %v2678_v0  ;;  %3160 = vst [vmem:[#allocation9_spill] sm:$0xff] %v2680_v13  ;;  %v1408_v44 = vmax.f32 %v936_v24, 0.0  ;;  %v928_v56 = vadd.f32 %v2446_v38, %v927_v5  ;;  %v1216_v52 = vadd.f32 %v2446_v38, %v1215_v46  ;;  %v1155_v55 = vadd.f32 %v2446_v38, %v2532_v28 }
 0x111   :  { %v1480_v26 = vmax.f32 %v1224_v34, 0.0  ;;  %v2692_v9 = vmax.f32 %v3161_v20, %v1403_v45  ;;  %v2696_v10 = vmax.f32 %v3163_v29, %v1475_v60  ;;  %v1927_v47 = vpop.f32.mrf.mxu0  ;;  %v1999_v2 = vpop.f32.mrf.mxu1  ;;  %v1391_v34 = vmax.f32 %v867_v4, 0.0 }
 0x112   :  { %v2698_v12 = vmax.f32 %v1390_v19, %v1408_v44  ;;  %v1406_v54 = vmax.f32 %v928_v56, 0.0  ;;  %v1478_v53 = vmax.f32 %v1216_v52, 0.0  ;;  %v939_v27 = vadd.f32 %v1927_v47, %v2446_v38 }
 0x113   :  { %3162 = vst [vmem:[#allocation10_spill] sm:$0xff] %v2692_v9  ;;  %3164 = vst [vmem:[#allocation11_spill] sm:$0xff] %v2696_v10  ;;  %v2700_v50 = vmax.f32 %v1462_v61, %v1480_v26  ;;  %v1227_v28 = vadd.f32 %v1999_v2, %v2446_v38  ;;  %v930_v3 = vpop.f32.mrf.mxu0  ;;  %v1218_v31 = vpop.f32.mrf.mxu1  ;;  %v1463_v19 = vmax.f32 %v1155_v55, 0.0  ;;  %v1389_v46 = vmax.f32 %v859_v7, 0.0 }
 0x114   :  { %3165 = vst [vmem:[#allocation12_spill] sm:$0xff] %v2698_v12  ;;  %v2706_v57 = vmax.f32 %v1388_v36, %v1406_v54  ;;  %v2710_v51 = vmax.f32 %v1460_v33, %v1478_v53  ;;  %v931_v23 = vadd.f32 %v2446_v38, %v930_v3  ;;  %v1219_v24 = vadd.f32 %v2446_v38, %v1218_v31 }
 0x115   :  { %3166 = vst [vmem:[#allocation13_spill] sm:$0xff] %v2700_v50  ;;  %v1409_v61 = vmax.f32 %v939_v27, 0.0  ;;  %v1481_v45 = vmax.f32 %v1227_v28, 0.0  ;;  %v1930_v60 = vpop.f32.mrf.mxu0  ;;  %v2002_v5 = vpop.f32.mrf.mxu1  ;;  %v1461_v44 = vmax.f32 %v1147_v8, 0.0 }
 0x116   :  { %3167 = vst [vmem:[#allocation14_spill] sm:$0xff] %v2706_v57  ;;  %3168 = vst [vmem:[#allocation15_spill] sm:$0xff] %v2710_v51  ;;  %v1407_v26 = vmax.f32 %v931_v23, 0.0  ;;  %v1479_v37 = vmax.f32 %v1219_v24, 0.0 }
 0x117   :  { %v2714_v36 = vmax.f32 %v1391_v34, %v1409_v61  ;;  %v2716_v56 = vmax.f32 %v1463_v19, %v1481_v45  ;;  %v943_v17 = vpop.f32.mrf.mxu0  ;;  %v1231_v33 = vpop.f32.mrf.mxu1  ;;  %v2723_v45 = vadd.f32 %v1930_v60, %v2446_v38 }
 0x118   :  { %v2718_v52 = vmax.f32 %v1389_v46, %v1407_v26  ;;  %v2720_v20 = vmax.f32 %v1461_v44, %v1479_v37  ;;  %v2726_v46 = vadd.f32 %v2002_v5, %v2446_v38  ;;  %v2729_v44 = vadd.f32 %v2446_v38, %v943_v17 }
 0x119   :  { %3169 = vst [vmem:[#allocation16_spill] sm:$0xff] %v2714_v36  ;;  %3170 = vst [vmem:[#allocation17_spill] sm:$0xff] %v2716_v56  ;;  %v1931_v4 = vpop.f32.mrf.mxu0  ;;  %v2003_v55 = vpop.f32.mrf.mxu1  ;;  %v2732_v26 = vadd.f32 %v2446_v38, %v1231_v33 }
 0x11a   :  { %3171 = vst [vmem:[#allocation18_spill] sm:$0xff] %v2718_v52  ;;  %3172 = vst [vmem:[#allocation19_spill] sm:$0xff] %v2720_v20  ;;  %v2735_v52 = vadd.f32 %v1931_v4, %v2446_v38  ;;  %v2738_v56 = vadd.f32 %v2003_v55, %v2446_v38 }
 0x11b   :  { %v946_v29 = vpop.f32.mrf.mxu0  ;;  %v1234_v47 = vpop.f32.mrf.mxu1 }
 0x11c   :  { %v2741_v60 = vadd.f32 %v2446_v38, %v946_v29  ;;  %v2744_v5 = vadd.f32 %v2446_v38, %v1234_v47  ;;  %v1410_v47 = vmax.f32 %v2729_v44, 0.0 }
 0x11d   :  { %v1934_v2 = vpop.f32.mrf.mxu0  ;;  %v2006_v54 = vpop.f32.mrf.mxu1 }
 0x11e   :  { %v2747_v17 = vadd.f32 %v1934_v2, %v2446_v38  ;;  %v2750_v33 = vadd.f32 %v2006_v54, %v2446_v38  ;;  %v1482_v2 = vmax.f32 %v2732_v26, 0.0 }
 0x11f   :  { %v959_v7 = vpop.f32.mrf.mxu0  ;;  %v1247_v8 = vpop.f32.mrf.mxu1 }
 0x120   :  { %v2755_v55 = vadd.f32 %v2446_v38, %v959_v7  ;;  %v2758_v29 = vadd.f32 %v2446_v38, %v1247_v8 }
 0x121   :  { %v1935_v53 = vpop.f32.mrf.mxu0  ;;  %v2007_v27 = vpop.f32.mrf.mxu1 }
 0x122   :  { %v2763_v50 = vadd.f32 %v1935_v53, %v2446_v38  ;;  %v2766_v54 = vadd.f32 %v2007_v27, %v2446_v38 }
 0x123   :  { %v962_v28 = vpop.f32.mrf.mxu0  ;;  %v1250_v3 = vpop.f32.mrf.mxu1 }
 0x124   :  { %3173 = vst [vmem:[#allocation20_spill] sm:$0xff] %v2766_v54  ;;  %v2771_v10 = vadd.f32 %v2446_v38, %v962_v28  ;;  %v2774_v8 = vadd.f32 %v2446_v38, %v1250_v3 }
 0x125   :  { %v1938_v31 = vpop.f32.mrf.mxu0  ;;  %v2010_v23 = vpop.f32.mrf.mxu1 }
 0x126   :  { %v2783_v28 = vadd.f32 %v1938_v31, %v2446_v38  ;;  %v2786_v3 = vadd.f32 %v2010_v23, %v2446_v38 }
 0x127   :  { %v975_v24 = vpop.f32.mrf.mxu0  ;;  %v1263_v34 = vpop.f32.mrf.mxu1 }
 0x128   :  { %3174 = vst [vmem:[#allocation21_spill] sm:$0xff] %v2783_v28  ;;  %3175 = vst [vmem:[#allocation22_spill] sm:$0xff] %v2786_v3  ;;  %v2791_v26 = vadd.f32 %v2446_v38, %v975_v24  ;;  %v2794_v27 = vadd.f32 %v2446_v38, %v1263_v34 }
 0x129   :  { %v1939_v19 = vpop.f32.mrf.mxu0  ;;  %v2011_v61 = vpop.f32.mrf.mxu1 }
 0x12a   :  { %v2799_v23 = vadd.f32 %v1939_v19, %v2446_v38  ;;  %v2802_v44 = vadd.f32 %v2011_v61, %v2446_v38 }
 0x12b   :  { %v978_v37 = vpop.f32.mrf.mxu0  ;;  %v1266_v20 = vpop.f32.mrf.mxu1 }
 0x12c   :  { %v2805_v53 = vadd.f32 %v2446_v38, %v978_v37  ;;  %v2808_v24 = vadd.f32 %v2446_v38, %v1266_v20 }
 0x12d   :  { %v1942_v36 = vpop.f32.mrf.mxu0  ;;  %v2014_v51 = vpop.f32.mrf.mxu1 }
 0x12e   :  { %v2811_v34 = vadd.f32 %v1942_v36, %v2446_v38  ;;  %v2814_v18 = vadd.f32 %v2014_v51, %v2446_v38 }
 0x12f   :  { %v991_v12 = vpop.f32.mrf.mxu0  ;;  %v1279_v4 = vpop.f32.mrf.mxu1 }
 0x130   :  { %3176 = vst [vmem:[#allocation23_spill] sm:$0xff] %v2814_v18  ;;  %v2823_v36 = vadd.f32 %v2446_v38, %v991_v12  ;;  %v2826_v51 = vadd.f32 %v2446_v38, %v1279_v4 }
 0x131   :  { %v1943_v9 = vpop.f32.mrf.mxu0  ;;  %v2015_v13 = vpop.f32.mrf.mxu1 }
 0x132   :  { %v2845_v18 = vadd.f32 %v1943_v9, %v2446_v38 }
 0x133   :  { %v994_v0 = vpop.f32.mrf.mxu0  ;;  %v1282_v57 = vpop.f32.mrf.mxu1 }
 0x134   :  { %v2835_v4 = vadd.f32 %v2446_v38, %v994_v0  ;;  %v2838_v54 = vadd.f32 %v2446_v38, %v1282_v57  ;;  %v2848_v0 = vadd.f32 %v2015_v13, %v2446_v38 }
 0x135   :  { %v1946_v7 = vpop.f32.mrf.mxu0  ;;  %v2018_v31 = vpop.f32.mrf.mxu1 }
 0x136   :  { %v1016_v61 = vadd.f32 %v1946_v7, %v2446_v38  ;;  %v1304_v37 = vadd.f32 %v2018_v31, %v2446_v38 }
 0x137   :  { %v1007_v25 = vpop.f32.mrf.mxu0  ;;  %v1295_v14 = vpop.f32.mrf.mxu1 }
 0x138   :  { %v1428_v3 = vmax.f32 %v1016_v61, 0.0  ;;  %v1500_v7 = vmax.f32 %v1304_v37, 0.0 }
 0x139   :  { %v1947_v28 = vpop.f32.mrf.mxu0  ;;  %v2019_v58 = vpop.f32.mrf.mxu1 }
 0x13a   :  { %v1554_v19 = vmax.f32 %v1410_v47, %v1428_v3  ;;  %v1572_v62 = vmax.f32 %v1482_v2, %v1500_v7  ;;  %v1019_v11 = vadd.f32 %v1947_v28, %v2446_v38  ;;  %v1307_v20 = vadd.f32 %v2019_v58, %v2446_v38 }
 0x13b   :  { %v1010_v31 = vpop.f32.mrf.mxu0  ;;  %v1298_v12 = vpop.f32.mrf.mxu1  ;;  %v2853_v2 = vadd.f32 %v2446_v38, %v1007_v25  ;;  %v2856_v3 = vadd.f32 %v2446_v38, %v1295_v14  ;;  %v3177_v14 = vmax.f32 %v2741_v60, 0.0 }
 0x13c   :  { %v1590_v57 = vmax.f32 %v2518_v21, %v1554_v19  ;;  %v1608_v47 = vmax.f32 %v2520_v22, %v1572_v62  ;;  %v1429_v28 = vmax.f32 %v1019_v11, 0.0  ;;  %v1501_v58 = vmax.f32 %v1307_v20, 0.0 }
 0x13d   :  { %v1950_v7 = vpop.f32.mrf.mxu0  ;;  %v2022_v37 = vpop.f32.mrf.mxu1  ;;  %v3178_v11 = vmax.f32 %v2744_v5, 0.0  ;;  %v2875_v13 = vadd.f32 %v2446_v38, %v1010_v31  ;;  %v2878_v19 = vadd.f32 %v2446_v38, %v1298_v12  ;;  %v1426_v60 = vmax.f32 %v2853_v2, 0.0 }
 0x13e   :  { %1627 = vst.msk [vmem:[%s3148_s3] sm:$0xff] %vm1626_vm3, %v1590_v57  ;;  %1645 = vst.msk [vmem:[%s3148_s3 + $0x90] sm:$0xff] %vm1626_vm3, %v1608_v47  ;;  %v1032_v21 = vadd.f32 %v1950_v7, %v2446_v38  ;;  %v1320_v22 = vadd.f32 %v2022_v37, %v2446_v38  ;;  %v1555_v25 = vmax.f32 %v3177_v14, %v1429_v28  ;;  %v1498_v28 = vmax.f32 %v2856_v3, 0.0  ;;  %v2115_v3 = vld [vmem:[%s3147_s2] ss:$0 sm:$0xff] }
 0x13f   :  { %v1573_v62 = vmax.f32 %v3178_v11, %v1501_v58  ;;  %v1023_v20 = vpop.f32.mrf.mxu0  ;;  %v1311_v57 = vpop.f32.mrf.mxu1  ;;  %v3179_v12 = vmax.f32 %v2755_v55, 0.0 }
 0x140   :  { %v1432_v61 = vmax.f32 %v1032_v21, 0.0  ;;  %v1504_v47 = vmax.f32 %v1320_v22, 0.0  ;;  %v1024_v7 = vadd.f32 %v2446_v38, %v1023_v20  ;;  %v1312_v37 = vadd.f32 %v2446_v38, %v1311_v57 }
 0x141   :  { %v1591_v5 = vmax.f32 %v2558_v1, %v1555_v25  ;;  %v1609_v31 = vmax.f32 %v2560_v35, %v1573_v62  ;;  %v1951_v58 = vpop.f32.mrf.mxu0  ;;  %v2023_v14 = vpop.f32.mrf.mxu1  ;;  %v3180_v21 = vmax.f32 %v2758_v29, 0.0  ;;  %v1427_v1 = vmax.f32 %v2875_v13, 0.0 }
 0x142   :  { %v1558_v11 = vmax.f32 %v3179_v12, %v1432_v61  ;;  %v1430_v9 = vmax.f32 %v1024_v7, 0.0  ;;  %v1502_v20 = vmax.f32 %v1312_v37, 0.0  ;;  %v1035_v55 = vadd.f32 %v1951_v58, %v2446_v38 }
 0x143   :  { %v1576_v22 = vmax.f32 %v3180_v21, %v1504_v47  ;;  %1628 = vst.msk [vmem:[%s3148_s3 + $0x8] sm:$0xff] %vm1626_vm3, %v1591_v5  ;;  %1646 = vst.msk [vmem:[%s3148_s3 + $0x98] sm:$0xff] %vm1626_vm3, %v1609_v31  ;;  %v1323_v29 = vadd.f32 %v2023_v14, %v2446_v38  ;;  %v1026_v61 = vpop.f32.mrf.mxu0  ;;  %v1314_v25 = vpop.f32.mrf.mxu1  ;;  %v3181_v47 = vmax.f32 %v2723_v45, 0.0  ;;  %v3182_v37 = vmax.f32 %v2726_v46, 0.0 }
 0x144   :  { %v1594_v62 = vmax.f32 %v2568_v6, %v1558_v11  ;;  %v1433_v31 = vmax.f32 %v1035_v55, 0.0  ;;  %v1027_v21 = vadd.f32 %v2446_v38, %v1026_v61  ;;  %v1315_v58 = vadd.f32 %v2446_v38, %v1314_v25 }
 0x145   :  { %v1612_v57 = vmax.f32 %v2570_v59, %v1576_v22  ;;  %v1556_v7 = vmax.f32 %v3181_v47, %v1430_v9  ;;  %v1574_v5 = vmax.f32 %v3182_v37, %v1502_v20  ;;  %v1505_v12 = vmax.f32 %v1323_v29, 0.0  ;;  %v1954_v35 = vpop.f32.mrf.mxu0  ;;  %v2026_v14 = vpop.f32.mrf.mxu1 }
 0x146   :  { %1631 = vst.msk [vmem:[%s3148_s3 + $0x20] sm:$0xff] %vm1626_vm3, %v1594_v62  ;;  %v1048_v45 = vadd.f32 %v1954_v35, %v2446_v38  ;;  %v1336_v46 = vadd.f32 %v2026_v14, %v2446_v38  ;;  %v3183_v9 = vmax.f32 %v2771_v10, 0.0  ;;  %v3184_v22 = vmax.f32 %v2774_v8, 0.0 }
 0x147   :  { %1649 = vst.msk [vmem:[%s3148_s3 + $0xb0] sm:$0xff] %vm1626_vm3, %v1612_v57  ;;  %v1592_v6 = vmax.f32 %v2580_v15, %v1556_v7  ;;  %v1610_v59 = vmax.f32 %v2584_v16, %v1574_v5  ;;  %v1431_v55 = vmax.f32 %v1027_v21, 0.0  ;;  %v1503_v29 = vmax.f32 %v1315_v58, 0.0  ;;  %v1039_v61 = vpop.f32.mrf.mxu0  ;;  %v1327_v25 = vpop.f32.mrf.mxu1 }
 0x148   :  { %v1559_v11 = vmax.f32 %v3183_v9, %v1433_v31  ;;  %v1577_v20 = vmax.f32 %v3184_v22, %v1505_v12  ;;  %v1436_v15 = vmax.f32 %v1048_v45, 0.0  ;;  %v1508_v16 = vmax.f32 %v1336_v46, 0.0 }
 0x149   :  { %1629 = vst.msk [vmem:[%s3148_s3 + $0x10] sm:$0xff] %vm1626_vm3, %v1592_v6  ;;  %1647 = vst.msk [vmem:[%s3148_s3 + $0xa0] sm:$0xff] %vm1626_vm3, %v1610_v59  ;;  %v1040_v10 = vadd.f32 %v2446_v38, %v1039_v61  ;;  %v1328_v8 = vadd.f32 %v2446_v38, %v1327_v25  ;;  %v3185_v57 = vmax.f32 %v2735_v52, 0.0  ;;  %v3186_v7 = vmax.f32 %v2738_v56, 0.0  ;;  %v1955_v5 = vpop.f32.mrf.mxu0  ;;  %v2027_v31 = vpop.f32.mrf.mxu1 }
 0x14a   :  { %v1595_v35 = vmax.f32 %v2598_v63, %v1559_v11  ;;  %v1613_v62 = vmax.f32 %v2600_v39, %v1577_v20  ;;  %v3187_v12 = vmax.f32 %v2791_v26, 0.0  ;;  %v3188_v58 = vmax.f32 %v2794_v27, 0.0 }
 0x14b   :  { %v1557_v47 = vmax.f32 %v3185_v57, %v1431_v55  ;;  %v1575_v37 = vmax.f32 %v3186_v7, %v1503_v29  ;;  %v1434_v6 = vmax.f32 %v1040_v10, 0.0  ;;  %v1506_v59 = vmax.f32 %v1328_v8, 0.0  ;;  %v1042_v26 = vpop.f32.mrf.mxu0  ;;  %v1330_v27 = vpop.f32.mrf.mxu1 }
 0x14c   :  { %v1562_v21 = vmax.f32 %v3187_v12, %v1436_v15  ;;  %v1580_v14 = vmax.f32 %v3188_v58, %v1508_v16  ;;  %1632 = vst.msk [vmem:[%s3148_s3 + $0x28] sm:$0xff] %vm1626_vm3, %v1595_v35  ;;  %1650 = vst.msk [vmem:[%s3148_s3 + $0xb8] sm:$0xff] %vm1626_vm3, %v1613_v62  ;;  %v1051_v56 = vadd.f32 %v1955_v5, %v2446_v38  ;;  %v3189_v9 = vmax.f32 %v2747_v17, 0.0  ;;  %v3194_v12 = vld [vmem:[#allocation20_spill] sm:$0xff] }
 0x14d   :  { %v1593_v63 = vmax.f32 %v2604_v40, %v1557_v47  ;;  %v1611_v39 = vmax.f32 %v2608_v30, %v1575_v37  ;;  %v1339_v52 = vadd.f32 %v2027_v31, %v2446_v38  ;;  %v3190_v22 = vmax.f32 %v2750_v33, 0.0  ;;  %v1958_v17 = vpop.f32.mrf.mxu0  ;;  %v2030_v55 = vpop.f32.mrf.mxu1 }
 0x14e   :  { %v1598_v45 = vmax.f32 %v2614_v43, %v1562_v21  ;;  %v1616_v46 = vmax.f32 %v2616_v49, %v1580_v14  ;;  %v1560_v11 = vmax.f32 %v3189_v9, %v1434_v6  ;;  %v1437_v40 = vmax.f32 %v1051_v56, 0.0  ;;  %v3200_v9 = vld [vmem:[#allocation4_spill] sm:$0xff] }
 0x14f   :  { %v1578_v20 = vmax.f32 %v3190_v22, %v1506_v59  ;;  %1630 = vst.msk [vmem:[%s3148_s3 + $0x18] sm:$0xff] %vm1626_vm3, %v1593_v63  ;;  %1648 = vst.msk [vmem:[%s3148_s3 + $0xa8] sm:$0xff] %vm1626_vm3, %v1611_v39  ;;  %v1509_v30 = vmax.f32 %v1339_v52, 0.0  ;;  %v1043_v43 = vadd.f32 %v2446_v38, %v1042_v26  ;;  %v1331_v49 = vadd.f32 %v2446_v38, %v1330_v27  ;;  %v1055_v57 = vpop.f32.mrf.mxu0  ;;  %v1343_v47 = vpop.f32.mrf.mxu1  ;;  %v3201_v22 = vld [vmem:[#allocation5_spill] sm:$0xff] }
 0x150   :  { %1635 = vst.msk [vmem:[%s3148_s3 + $0x40] sm:$0xff] %vm1626_vm3, %v1598_v45  ;;  %1653 = vst.msk [vmem:[%s3148_s3 + $0xd0] sm:$0xff] %vm1626_vm3, %v1616_v46  ;;  %v1596_v33 = vmax.f32 %v2632_v41, %v1560_v11  ;;  %v1064_v61 = vadd.f32 %v1958_v17, %v2446_v38  ;;  %v1352_v25 = vadd.f32 %v2030_v55, %v2446_v38  ;;  %v3191_v15 = vmax.f32 %v2805_v53, 0.0 }
 0x151   :  { %v1614_v29 = vmax.f32 %v2636_v42, %v1578_v20  ;;  %v3192_v10 = vmax.f32 %v2808_v24, 0.0  ;;  %v1435_v35 = vmax.f32 %v1043_v43, 0.0  ;;  %v1507_v62 = vmax.f32 %v1331_v49, 0.0  ;;  %v1959_v14 = vpop.f32.mrf.mxu0  ;;  %v2031_v6 = vpop.f32.mrf.mxu1  ;;  %v3204_v49 = vld [vmem:[#allocation22_spill] sm:$0xff] }
 0x152   :  { %v1563_v16 = vmax.f32 %v3191_v15, %v1437_v40  ;;  %1633 = vst.msk [vmem:[%s3148_s3 + $0x30] sm:$0xff] %vm1626_vm3, %v1596_v33  ;;  %v1440_v41 = vmax.f32 %v1064_v61, 0.0  ;;  %v1512_v42 = vmax.f32 %v1352_v25, 0.0  ;;  %v1056_v53 = vadd.f32 %v2446_v38, %v1055_v57  ;;  %v3202_v40 = vld [vmem:[#allocation21_spill] sm:$0xff] }
 0x153   :  { %v1581_v8 = vmax.f32 %v3192_v10, %v1509_v30  ;;  %1651 = vst.msk [vmem:[%s3148_s3 + $0xc0] sm:$0xff] %vm1626_vm3, %v1614_v29  ;;  %v1344_v24 = vadd.f32 %v2446_v38, %v1343_v47  ;;  %v3193_v5 = vmax.f32 %v2763_v50, 0.0  ;;  %v3195_v21 = vmax.f32 %v3194_v12, 0.0  ;;  %v3199_v50 = vld [vmem:[#allocation3_spill] sm:$0xff]  ;;  %v1058_v45 = vpop.f32.mrf.mxu0  ;;  %v1346_v46 = vpop.f32.mrf.mxu1  ;;  %v3206_v10 = vld [vmem:[#allocation6_spill] sm:$0xff] }
 0x154   :  { %v1599_v7 = vmax.f32 %v2638_v32, %v1563_v16  ;;  %v3196_v59 = vmax.f32 %v2823_v36, 0.0  ;;  %v3197_v39 = vmax.f32 %v2826_v51, 0.0  ;;  %v1438_v52 = vmax.f32 %v1056_v53, 0.0  ;;  %v3198_v32 = vld [vmem:[#allocation2_spill] sm:$0xff] }
 0x155   :  { %v1617_v37 = vmax.f32 %v2640_v48, %v1581_v8  ;;  %v1561_v31 = vmax.f32 %v3193_v5, %v1435_v35  ;;  %v1579_v58 = vmax.f32 %v3195_v21, %v1507_v62  ;;  %v1510_v26 = vmax.f32 %v1344_v24, 0.0  ;;  %v1962_v15 = vpop.f32.mrf.mxu0  ;;  %v2034_v16 = vpop.f32.mrf.mxu1  ;;  %v3207_v35 = vld [vmem:[#allocation7_spill] sm:$0xff] }
 0x156   :  { %v1566_v63 = vmax.f32 %v3196_v59, %v1440_v41  ;;  %v1584_v56 = vmax.f32 %v3197_v39, %v1512_v42  ;;  %1636 = vst.msk [vmem:[%s3148_s3 + $0x48] sm:$0xff] %vm1626_vm3, %v1599_v7  ;;  %v1067_v27 = vadd.f32 %v1959_v14, %v2446_v38  ;;  %v1355_v51 = vadd.f32 %v2031_v6, %v2446_v38  ;;  %v3211_v6 = vld [vmem:[#allocation9_spill] sm:$0xff] }
 0x157   :  { %1654 = vst.msk [vmem:[%s3148_s3 + $0xd8] sm:$0xff] %vm1626_vm3, %v1617_v37  ;;  %v1597_v48 = vmax.f32 %v3198_v32, %v1561_v31  ;;  %v1615_v36 = vmax.f32 %v3199_v50, %v1579_v58  ;;  %v3203_v30 = vmax.f32 %v3202_v40, 0.0  ;;  %v3205_v17 = vmax.f32 %v3204_v49, 0.0  ;;  %v1071_v5 = vpop.f32.mrf.mxu0  ;;  %v1359_v31 = vpop.f32.mrf.mxu1  ;;  %v3210_v58 = vld [vmem:[#allocation8_spill] sm:$0xff] }
 0x158   :  { %v1602_v11 = vmax.f32 %v3200_v9, %v1566_v63  ;;  %v1620_v20 = vmax.f32 %v3201_v22, %v1584_v56  ;;  %v1441_v33 = vmax.f32 %v1067_v27, 0.0  ;;  %v1513_v29 = vmax.f32 %v1355_v51, 0.0  ;;  %v3215_v27 = vld [vmem:[#allocation11_spill] sm:$0xff] }
 0x159   :  { %v1564_v43 = vmax.f32 %v3203_v30, %v1438_v52  ;;  %v1582_v55 = vmax.f32 %v3205_v17, %v1510_v26  ;;  %1634 = vst.msk [vmem:[%s3148_s3 + $0x38] sm:$0xff] %vm1626_vm3, %v1597_v48  ;;  %1652 = vst.msk [vmem:[%s3148_s3 + $0xc8] sm:$0xff] %vm1626_vm3, %v1615_v36  ;;  %v1059_v61 = vadd.f32 %v2446_v38, %v1058_v45  ;;  %v3208_v41 = vmax.f32 %v2835_v4, 0.0  ;;  %v1963_v26 = vpop.f32.mrf.mxu0  ;;  %v2035_v32 = vpop.f32.mrf.mxu1  ;;  %v3219_v30 = vld [vmem:[#allocation23_spill] sm:$0xff] }
 0x15a   :  { %v1347_v25 = vadd.f32 %v2446_v38, %v1346_v46  ;;  %1639 = vst.msk [vmem:[%s3148_s3 + $0x60] sm:$0xff] %vm1626_vm3, %v1602_v11  ;;  %1657 = vst.msk [vmem:[%s3148_s3 + $0xf0] sm:$0xff] %vm1626_vm3, %v1620_v20  ;;  %v1080_v57 = vadd.f32 %v1962_v15, %v2446_v38  ;;  %v1368_v47 = vadd.f32 %v2034_v16, %v2446_v38  ;;  %v3209_v53 = vmax.f32 %v2838_v54, 0.0  ;;  %v3216_v46 = vld [vmem:[#allocation12_spill] sm:$0xff]  ;;  %v3217_v11 = vld [vmem:[#allocation13_spill] sm:$0xff] }
 0x15b   :  { %v1600_v8 = vmax.f32 %v3206_v10, %v1564_v43  ;;  %v1618_v62 = vmax.f32 %v3207_v35, %v1582_v55  ;;  %v1567_v42 = vmax.f32 %v3208_v41, %v1441_v33  ;;  %v1439_v7 = vmax.f32 %v1059_v61, 0.0  ;;  %v1074_v51 = vpop.f32.mrf.mxu0  ;;  %v1362_v45 = vpop.f32.mrf.mxu1  ;;  %v3222_v16 = vld [vmem:[#allocation15_spill] sm:$0xff]  ;;  %v3225_v41 = vld [vmem:[#allocation17_spill] sm:$0xff] }
 0x15c   :  { %v1585_v24 = vmax.f32 %v3209_v53, %v1513_v29  ;;  %v1511_v37 = vmax.f32 %v1347_v25, 0.0  ;;  %v1444_v12 = vmax.f32 %v1080_v57, 0.0  ;;  %v1516_v4 = vmax.f32 %v1368_v47, 0.0  ;;  %v3221_v25 = vld [vmem:[#allocation14_spill] sm:$0xff]  ;;  %v3224_v57 = vld [vmem:[#allocation16_spill] sm:$0xff] }
 0x15d   :  { %1637 = vst.msk [vmem:[%s3148_s3 + $0x50] sm:$0xff] %vm1626_vm3, %v1600_v8  ;;  %1655 = vst.msk [vmem:[%s3148_s3 + $0xe0] sm:$0xff] %vm1626_vm3, %v1618_v62  ;;  %v1072_v21 = vadd.f32 %v2446_v38, %v1071_v5  ;;  %v1360_v54 = vadd.f32 %v2446_v38, %v1359_v31  ;;  %v1603_v14 = vmax.f32 %v3210_v58, %v1567_v42  ;;  %v3212_v63 = vmax.f32 %v2799_v23, 0.0 }
 0x15e   :  { %v1621_v59 = vmax.f32 %v3211_v6, %v1585_v24  ;;  %v3213_v56 = vmax.f32 %v2802_v44, 0.0  ;;  %v1570_v48 = vmax.f32 %v1426_v60, %v1444_v12  ;;  %v1588_v50 = vmax.f32 %v1498_v28, %v1516_v4  ;;  %v3214_v44 = vld [vmem:[#allocation10_spill] sm:$0xff]  ;;  %v3227_v24 = vld [vmem:[#allocation19_spill] sm:$0xff] }
 0x15f   :  { %v1565_v39 = vmax.f32 %v3212_v63, %v1439_v7  ;;  %v1442_v36 = vmax.f32 %v1072_v21, 0.0  ;;  %v1514_v38 = vmax.f32 %v1360_v54, 0.0  ;;  %1640 = vst.msk [vmem:[%s3148_s3 + $0x68] sm:$0xff] %vm1626_vm3, %v1603_v14  ;;  %v1083_v60 = vadd.f32 %v2115_v3, %v1963_v26 }
 0x160   :  { %v1583_v52 = vmax.f32 %v3213_v56, %v1511_v37  ;;  %1658 = vst.msk [vmem:[%s3148_s3 + $0xf8] sm:$0xff] %vm1626_vm3, %v1621_v59  ;;  %v1371_v28 = vadd.f32 %v2115_v3, %v2035_v32  ;;  %v1606_v9 = vmax.f32 %v3216_v46, %v1570_v48  ;;  %v1624_v22 = vmax.f32 %v3217_v11, %v1588_v50 }
 0x161   :  { %v1601_v23 = vmax.f32 %v3214_v44, %v1565_v39  ;;  %v3218_v20 = vmax.f32 %v2811_v34, 0.0  ;;  %v3220_v43 = vmax.f32 %v3219_v30, 0.0  ;;  %v1445_v17 = vmax.f32 %v1083_v60, 0.0 }
 0x162   :  { %v1619_v2 = vmax.f32 %v3215_v27, %v1583_v52  ;;  %v1517_v55 = vmax.f32 %v1371_v28, 0.0  ;;  %v1075_v33 = vadd.f32 %v2115_v3, %v1074_v51  ;;  %v1363_v29 = vadd.f32 %v2115_v3, %v1362_v45  ;;  %1643 = vst.msk [vmem:[%s3148_s3 + $0x80] sm:$0xff] %vm1626_vm3, %v1606_v9  ;;  %1661 = vst.msk [vmem:[%s3148_s3 + $0x110] sm:$0xff] %vm1626_vm3, %v1624_v22 }
 0x163   :  { %v1568_v40 = vmax.f32 %v3218_v20, %v1442_v36  ;;  %v1586_v49 = vmax.f32 %v3220_v43, %v1514_v38  ;;  %1638 = vst.msk [vmem:[%s3148_s3 + $0x58] sm:$0xff] %vm1626_vm3, %v1601_v23  ;;  %v1425_v34 = vmax.f32 %v2845_v18, 0.0  ;;  %v1497_v61 = vmax.f32 %v2848_v0, 0.0 }
 0x164   :  { %1656 = vst.msk [vmem:[%s3148_s3 + $0xe8] sm:$0xff] %vm1626_vm3, %v1619_v2  ;;  %v1571_v8 = vmax.f32 %v1427_v1, %v1445_v17  ;;  %v3223_v18 = vmax.f32 %v2878_v19, 0.0  ;;  %v1443_v35 = vmax.f32 %v1075_v33, 0.0  ;;  %v1515_v62 = vmax.f32 %v1363_v29, 0.0  ;;  %v3226_v19 = vld [vmem:[#allocation18_spill] sm:$0xff] }
 0x165   :  { %v1604_v15 = vmax.f32 %v3221_v25, %v1568_v40  ;;  %v1622_v10 = vmax.f32 %v3222_v16, %v1586_v49 }
 0x166   :  { %v1589_v0 = vmax.f32 %v3223_v18, %v1517_v55  ;;  %v1607_v47 = vmax.f32 %v3224_v57, %v1571_v8  ;;  %v1569_v1 = vmax.f32 %v1425_v34, %v1443_v35  ;;  %v1587_v42 = vmax.f32 %v1497_v61, %v1515_v62 }
 0x167   :  { %1641 = vst.msk [vmem:[%s3148_s3 + $0x70] sm:$0xff] %vm1626_vm3, %v1604_v15  ;;  %1659 = vst.msk [vmem:[%s3148_s3 + $0x100] sm:$0xff] %vm1626_vm3, %v1622_v10 }
 0x168   :  { %v1625_v13 = vmax.f32 %v3225_v41, %v1589_v0  ;;  %1644 = vst.msk [vmem:[%s3148_s3 + $0x88] sm:$0xff] %vm1626_vm3, %v1607_v47  ;;  %v1605_v53 = vmax.f32 %v3226_v19, %v1569_v1  ;;  %v1623_v7 = vmax.f32 %v3227_v24, %v1587_v42 }
 0x16a   :  { %1662 = vst.msk [vmem:[%s3148_s3 + $0x118] sm:$0xff] %vm1626_vm3, %v1625_v13  ;;  %1642 = vst.msk [vmem:[%s3148_s3 + $0x78] sm:$0xff] %vm1626_vm3, %v1605_v53 }
 0x16b   :  { %1660 = vst.msk [vmem:[%s3148_s3 + $0x108] sm:$0xff] %vm1626_vm3, %v1623_v7 }

// kernel: cnn3_forward.4
= control target key start
LH: loop header
LB: loop body
LE: loop exit
PB: predicated region body
PF: predicated region fallthrough
CT: control target
= control target key end

     0   :  { %v866_v0 = vmov 0   ;;  %vm406_vm0 = vcmask 130048   ;;  %vm653_vm1 = vcmask 261120   ;;  %s1112_s1 = inlined_call_operand.vmem [shape: bf16[400,32], index: 1, kind: input, shape index: {}]   ;;  %s1113_s0 = inlined_call_operand.vmem [shape: bf16[2,64,400], index: 0, kind: input, shape index: {}]   ;;  %s1114_s2 = inlined_call_operand.vmem [shape: f32[1,32], index: 2, kind: input, shape index: {}]   ;;  %s1115_s3 = inlined_call_operand.vmem [shape: f32[2,16,32], index: 3, kind: output, shape index: {}]  }
   0x1   :  { %528 = vmatprep.subr.bf16.mxu1 %v866_v0  ;;  %v793_v1 = vld [vmem:[%s1112_s1 + $0x78] sm:$0xff]   ;;  %v796_v4 = vld [vmem:[%s1112_s1 + $0x70] sm:$0xff]   ;;  %v799_v7 = vld [vmem:[%s1112_s1 + $0x68] sm:$0xff]  }
   0x2   :  { %v794_v2 = vld [vmem:[%s1112_s1 + $0xb8] sm:$0xff]   ;;  %728 = vmatprep.subr.bf16.mxu0 %v793_v1  ;;  %v797_v5 = vld [vmem:[%s1112_s1 + $0xb0] sm:$0xff]   ;;  %v800_v8 = vld [vmem:[%s1112_s1 + $0xa8] sm:$0xff]  }
   0x3   :  { %v795_v3 = vld [vmem:[%s1112_s1 + $0x38] sm:$0xff]   ;;  %529 = vmatpush1.bf16.msra.mxu1 %v794_v2  ;;  %v798_v6 = vld [vmem:[%s1112_s1 + $0x30] sm:$0xff]   ;;  %v801_v9 = vld [vmem:[%s1112_s1 + $0x28] sm:$0xff]  }
   0x4   :  { %729 = vmatpush3.bf16.msra.mxu0 %v795_v3  ;;  %530 = vmatprep.subr.bf16.mxu1 %v866_v0  ;;  %v802_v10 = vld [vmem:[%s1112_s1 + $0x60] sm:$0xff]   ;;  %v805_v13 = vld [vmem:[%s1112_s1 + $0x58] sm:$0xff]   ;;  %v808_v16 = vld [vmem:[%s1112_s1 + $0x50] sm:$0xff]  }
   0x5   :  { %730 = vmatprep.subr.bf16.mxu0 %v796_v4  ;;  %v803_v11 = vld [vmem:[%s1112_s1 + $0xa0] sm:$0xff]   ;;  %v806_v14 = vld [vmem:[%s1112_s1 + $0x98] sm:$0xff]   ;;  %v809_v17 = vld [vmem:[%s1112_s1 + $0x90] sm:$0xff]  }
   0x6   :  { %v804_v12 = vld [vmem:[%s1112_s1 + $0x20] sm:$0xff]   ;;  %v807_v15 = vld [vmem:[%s1112_s1 + $0x18] sm:$0xff]   ;;  %v810_v18 = vld [vmem:[%s1112_s1 + $0x10] sm:$0xff]  }
   0x7   :  { %531 = vmatpush1.bf16.msra.mxu1 %v797_v5  ;;  %v811_v19 = vld [vmem:[%s1112_s1 + $0x48] sm:$0xff]   ;;  %v814_v22 = vld [vmem:[%s1112_s1 + $0x40] sm:$0xff]  }
   0x8   :  { %731 = vmatpush3.bf16.msra.mxu0 %v798_v6  ;;  %532 = vmatprep.subr.bf16.mxu1 %v866_v0  ;;  %v812_v20 = vld [vmem:[%s1112_s1 + $0x88] sm:$0xff]   ;;  %v819_v23 = vld [vmem:[%s1113_s0 + $0x4] ss:$16 sps:$4 sm:$0xff]   ;;  %v817_v27 = vld [vmem:[%s1113_s0] ss:$16 sps:$4 sm:$0xff]  }
   0x9   :  { %732 = vmatprep.subr.bf16.mxu0 %v799_v7  ;;  %v813_v21 = vld [vmem:[%s1112_s1 + $0x8] sm:$0xff]   ;;  %v815_v24 = vld [vmem:[%s1112_s1 + $0x80] sm:$0xff]   ;;  %463 = vmatprep.mubr.bf16.mxu0 %v819_v23 }
   0xa   :  { %v823_v25 = vld [vmem:[%s1113_s0 + $0xc] ss:$16 sps:$4 sm:$0xff]   ;;  %v816_v26 = vld [vmem:[%s1112_s1] sm:$0xff]   ;;  %v821_v30 = vld [vmem:[%s1113_s0 + $0x8] ss:$16 sps:$4 sm:$0xff]  }
   0xb   :  { %533 = vmatpush1.bf16.msra.mxu1 %v800_v8  ;;  %720 = vmatprep.mubr.msk.bf16.mxu1 %vm406_vm0, %v823_v25  ;;  %v820_v28 = vld [vmem:[%s1112_s1 + $0xc0] sm:$0xff]   ;;  %v827_v31 = vld [vmem:[%s1113_s0 + $0x2c] ss:$16 sps:$4 sm:$0xff]   ;;  %v829_v34 = vld [vmem:[%s1113_s0 + $0x28] ss:$16 sps:$4 sm:$0xff]  }
   0xc   :  { %733 = vmatpush3.bf16.msra.mxu0 %v801_v9  ;;  %534 = vmatprep.subr.bf16.mxu1 %v866_v0  ;;  %v824_v29 = vld [vmem:[%s1113_s0 + $0x24] ss:$16 sps:$4 sm:$0xff]   ;;  %v826_v32 = vld [vmem:[%s1113_s0 + $0x20] ss:$16 sps:$4 sm:$0xff]   ;;  %v833_v35 = vld [vmem:[%s1113_s0 + $0x4c] ss:$16 sps:$4 sm:$0xff]  }
   0xd   :  { %734 = vmatprep.subr.bf16.mxu0 %v802_v10  ;;  %v830_v33 = vld [vmem:[%s1113_s0 + $0x44] ss:$16 sps:$4 sm:$0xff]   ;;  %v832_v36 = vld [vmem:[%s1113_s0 + $0x40] ss:$16 sps:$4 sm:$0xff]   ;;  %v835_v38 = vld [vmem:[%s1113_s0 + $0x48] ss:$16 sps:$4 sm:$0xff]  }
   0xe   :  { %v836_v37 = vld [vmem:[%s1113_s0 + $0x64] ss:$16 sps:$4 sm:$0xff]   ;;  %v839_v39 = vld [vmem:[%s1113_s0 + $0x6c] ss:$16 sps:$4 sm:$0xff]   ;;  %v838_v40 = vld [vmem:[%s1113_s0 + $0x60] ss:$16 sps:$4 sm:$0xff]  }
   0xf   :  { %535 = vmatpush1.bf16.msra.mxu1 %v803_v11  ;;  %v842_v41 = vld [vmem:[%s1113_s0 + $0x84] ss:$16 sps:$4 sm:$0xff]   ;;  %v841_v42 = vld [vmem:[%s1113_s0 + $0x68] ss:$16 sps:$4 sm:$0xff]   ;;  %v845_v43 = vld [vmem:[%s1113_s0 + $0x8c] ss:$16 sps:$4 sm:$0xff]  }
  0x10   :  { %735 = vmatpush3.bf16.msra.mxu0 %v804_v12  ;;  %536 = vmatprep.subr.bf16.mxu1 %v866_v0  ;;  %v844_v44 = vld [vmem:[%s1113_s0 + $0x80] ss:$16 sps:$4 sm:$0xff]   ;;  %v848_v45 = vld [vmem:[%s1113_s0 + $0xa4] ss:$16 sps:$4 sm:$0xff]   ;;  %v847_v46 = vld [vmem:[%s1113_s0 + $0x88] ss:$16 sps:$4 sm:$0xff]  }
  0x11   :  { %736 = vmatprep.subr.bf16.mxu0 %v805_v13  ;;  %v851_v47 = vld [vmem:[%s1113_s0 + $0xac] ss:$16 sps:$4 sm:$0xff]   ;;  %v850_v48 = vld [vmem:[%s1113_s0 + $0xa0] ss:$16 sps:$4 sm:$0xff]   ;;  %v854_v49 = vld [vmem:[%s1113_s0 + $0xc4] ss:$16 sps:$4 sm:$0xff]  }
  0x12   :  { %v853_v50 = vld [vmem:[%s1113_s0 + $0xa8] ss:$16 sps:$4 sm:$0xff]   ;;  %v857_v51 = vld [vmem:[%s1113_s0 + $0xcc] ss:$16 sps:$4 sm:$0xff]   ;;  %v856_v52 = vld [vmem:[%s1113_s0 + $0xc0] ss:$16 sps:$4 sm:$0xff]  }
  0x13   :  { %537 = vmatpush1.bf16.msra.mxu1 %v806_v14  ;;  %v860_v53 = vld [vmem:[%s1113_s0 + $0xe4] ss:$16 sps:$4 sm:$0xff]   ;;  %v859_v54 = vld [vmem:[%s1113_s0 + $0xc8] ss:$16 sps:$4 sm:$0xff]   ;;  %v863_v55 = vld [vmem:[%s1113_s0 + $0xec] ss:$16 sps:$4 sm:$0xff]  }
  0x14   :  { %737 = vmatpush3.bf16.msra.mxu0 %v807_v15  ;;  %538 = vmatprep.subr.bf16.mxu1 %v866_v0  ;;  %v862_v56 = vld [vmem:[%s1113_s0 + $0xe0] ss:$16 sps:$4 sm:$0xff]   ;;  %v865_v57 = vld [vmem:[%s1113_s0 + $0xe8] ss:$16 sps:$4 sm:$0xff]  }
  0x15   :  { %738 = vmatprep.subr.bf16.mxu0 %v808_v16  ;;  %v1078_v16 = vld [vmem:[%s1114_s2] ss:$0 sm:$0xff] }
  0x17   :  { %539 = vmatpush1.bf16.msra.mxu1 %v809_v17 }
  0x18   :  { %739 = vmatpush3.bf16.msra.mxu0 %v810_v18  ;;  %540 = vmatprep.subr.bf16.mxu1 %v866_v0 }
  0x19   :  { %740 = vmatprep.subr.bf16.mxu0 %v811_v19 }
  0x1b   :  { %541 = vmatpush1.bf16.msra.mxu1 %v812_v20 }
  0x1c   :  { %741 = vmatpush3.bf16.msra.mxu0 %v813_v21  ;;  %542 = vmatprep.subr.bf16.mxu1 %v866_v0 }
  0x1d   :  { %742 = vmatprep.subr.bf16.mxu0 %v814_v22 }
  0x1f   :  { %543 = vmatpush1.bf16.msra.mxu1 %v815_v24 }
  0x20   :  { %743 = vmatpush3.bf16.msra.mxu0 %v816_v26  ;;  %558 = vmatprep.subr.bf16.mxu1 %v866_v0 }
  0x23   :  { %464 = vmatmul.mubr.bf16.vlgmr.msra.gmra.mxu0 %v817_v27  ;;  %559 = vmatpush2.bf16.msra.mxu1 %v820_v28 }
  0x24   :  { %471 = vmatprep.mubr.bf16.mxu0 %v824_v29 }
  0x26   :  { %561 = vmatmul.mubr.bf16.vlgmr.msra.gmra.mxu1 %v821_v30 }
  0x27   :  { %721 = vmatprep.mubr.msk.bf16.mxu1 %vm406_vm0, %v827_v31 }
  0x2b   :  { %472 = vmatmul.mubr.bf16.gmra.mxu0 %v826_v32 }
  0x2c   :  { %479 = vmatprep.mubr.bf16.mxu0 %v830_v33 }
  0x2e   :  { %569 = vmatmul.mubr.bf16.gmra.mxu1 %v829_v34 }
  0x2f   :  { %722 = vmatprep.mubr.msk.bf16.mxu1 %vm406_vm0, %v833_v35 }
  0x33   :  { %480 = vmatmul.mubr.bf16.gmra.mxu0 %v832_v36 }
  0x34   :  { %487 = vmatprep.mubr.bf16.mxu0 %v836_v37 }
  0x36   :  { %577 = vmatmul.mubr.bf16.gmra.mxu1 %v835_v38 }
  0x37   :  { %723 = vmatprep.mubr.msk.bf16.mxu1 %vm406_vm0, %v839_v39 }
  0x3b   :  { %488 = vmatmul.mubr.bf16.gmra.mxu0 %v838_v40 }
  0x3c   :  { %495 = vmatprep.mubr.bf16.mxu0 %v842_v41 }
  0x3e   :  { %585 = vmatmul.mubr.bf16.gmra.mxu1 %v841_v42 }
  0x3f   :  { %724 = vmatprep.mubr.msk.bf16.mxu1 %vm406_vm0, %v845_v43 }
  0x43   :  { %496 = vmatmul.mubr.bf16.gmra.mxu0 %v844_v44 }
  0x44   :  { %503 = vmatprep.mubr.bf16.mxu0 %v848_v45 }
  0x46   :  { %593 = vmatmul.mubr.bf16.gmra.mxu1 %v847_v46 }
  0x47   :  { %725 = vmatprep.mubr.msk.bf16.mxu1 %vm406_vm0, %v851_v47 }
  0x4b   :  { %504 = vmatmul.mubr.bf16.gmra.mxu0 %v850_v48 }
  0x4c   :  { %511 = vmatprep.mubr.bf16.mxu0 %v854_v49 }
  0x4e   :  { %601 = vmatmul.mubr.bf16.gmra.mxu1 %v853_v50 }
  0x4f   :  { %726 = vmatprep.mubr.msk.bf16.mxu1 %vm406_vm0, %v857_v51 }
  0x53   :  { %512 = vmatmul.mubr.bf16.gmra.mxu0 %v856_v52 }
  0x54   :  { %519 = vmatprep.mubr.bf16.mxu0 %v860_v53 }
  0x56   :  { %609 = vmatmul.mubr.bf16.gmra.mxu1 %v859_v54 }
  0x57   :  { %727 = vmatprep.mubr.msk.bf16.mxu1 %vm406_vm0, %v863_v55 }
  0x5b   :  { %520 = vmatmul.mubr.bf16.gmra.mxu0 %v862_v56 }
  0x5e   :  { %617 = vmatmul.mubr.bf16.gmra.mxu1 %v865_v57 }
  0xe3   :  { %v744_v58 = vpop.f32.mrf.mxu0 }
  0xe5   :  { %v745_v59 = vpop.f32.mrf.mxu0 }
  0xe6   :  { %v562_v60 = vpop.f32.mrf.mxu1  ;;  %v746_v14 = vadd.f32 %v745_v59, %v744_v58 }
  0xe7   :  { %v747_v61 = vpop.f32.mrf.mxu0 }
  0xe8   :  { %v564_v62 = vpop.f32.mrf.mxu1  ;;  %v466_v23 = vadd.f32 %v746_v14, %v1078_v16 }
  0xe9   :  { %v748_v63 = vpop.f32.mrf.mxu0 }
  0xea   :  { %v565_v0 = vpop.f32.mrf.mxu1  ;;  %v749_v24 = vadd.f32 %v748_v63, %v747_v61  ;;  %v563_v34 = vadd.f32 %v562_v60, %v466_v23 }
  0xeb   :  { %v750_v1 = vpop.f32.mrf.mxu0 }
  0xec   :  { %v567_v2 = vpop.f32.mrf.mxu1  ;;  %v469_v35 = vadd.f32 %v749_v24, %v1078_v16  ;;  %v625_v47 = vmax.f32 %v563_v34, 0.0 }
  0xed   :  { %v751_v3 = vpop.f32.mrf.mxu0 }
  0xee   :  { %v570_v4 = vpop.f32.mrf.mxu1  ;;  %v752_v12 = vadd.f32 %v751_v3, %v750_v1  ;;  %v566_v48 = vadd.f32 %v565_v0, %v469_v35 }
  0xef   :  { %v753_v5 = vpop.f32.mrf.mxu0 }
  0xf0   :  { %v572_v6 = vpop.f32.mrf.mxu1  ;;  %v474_v20 = vadd.f32 %v752_v12, %v1078_v16  ;;  %v626_v62 = vmax.f32 %v566_v48, 0.0 }
  0xf1   :  { %v754_v7 = vpop.f32.mrf.mxu0 }
  0xf2   :  { %v573_v8 = vpop.f32.mrf.mxu1  ;;  %v755_v21 = vadd.f32 %v754_v7, %v753_v5  ;;  %v571_v30 = vadd.f32 %v570_v4, %v474_v20 }
  0xf3   :  { %v756_v9 = vpop.f32.mrf.mxu0 }
  0xf4   :  { %v575_v10 = vpop.f32.mrf.mxu1  ;;  %v477_v31 = vadd.f32 %v755_v21, %v1078_v16  ;;  %v627_v42 = vmax.f32 %v571_v30, 0.0 }
  0xf5   :  { %v757_v11 = vpop.f32.mrf.mxu0 }
  0xf6   :  { %v578_v13 = vpop.f32.mrf.mxu1  ;;  %v758_v17 = vadd.f32 %v757_v11, %v756_v9  ;;  %v574_v43 = vadd.f32 %v573_v8, %v477_v31  ;;  %v641_v56 = vmax.f32 %v625_v47, %v627_v42 }
  0xf7   :  { %v759_v15 = vpop.f32.mrf.mxu0 }
  0xf8   :  { %v580_v18 = vpop.f32.mrf.mxu1  ;;  %v482_v26 = vadd.f32 %v758_v17, %v1078_v16  ;;  %v628_v57 = vmax.f32 %v574_v43, 0.0 }
  0xf9   :  { %v760_v19 = vpop.f32.mrf.mxu0 }
  0xfa   :  { %v581_v22 = vpop.f32.mrf.mxu1  ;;  %v761_v27 = vadd.f32 %v760_v19, %v759_v15  ;;  %v579_v37 = vadd.f32 %v578_v13, %v482_v26  ;;  %v642_v4 = vmax.f32 %v626_v62, %v628_v57 }
  0xfb   :  { %v762_v25 = vpop.f32.mrf.mxu0 }
  0xfc   :  { %v583_v28 = vpop.f32.mrf.mxu1  ;;  %v485_v38 = vadd.f32 %v761_v27, %v1078_v16  ;;  %v629_v50 = vmax.f32 %v579_v37, 0.0 }
  0xfd   :  { %v763_v29 = vpop.f32.mrf.mxu0 }
  0xfe   :  { %v764_v32 = vadd.f32 %v763_v29, %v762_v25  ;;  %v586_v33 = vpop.f32.mrf.mxu1  ;;  %v582_v51 = vadd.f32 %v581_v22, %v485_v38 }
  0xff   :  { %v765_v36 = vpop.f32.mrf.mxu0 }
 0x100   :  { %v490_v39 = vadd.f32 %v764_v32, %v1078_v16  ;;  %v588_v40 = vpop.f32.mrf.mxu1  ;;  %v630_v63 = vmax.f32 %v582_v51, 0.0 }
 0x101   :  { %v766_v41 = vpop.f32.mrf.mxu0 }
 0x102   :  { %v587_v44 = vadd.f32 %v586_v33, %v490_v39  ;;  %v767_v45 = vadd.f32 %v766_v41, %v765_v36  ;;  %v589_v46 = vpop.f32.mrf.mxu1 }
 0x103   :  { %v768_v49 = vpop.f32.mrf.mxu0 }
 0x104   :  { %v631_v52 = vmax.f32 %v587_v44, 0.0  ;;  %v493_v53 = vadd.f32 %v767_v45, %v1078_v16  ;;  %v591_v54 = vpop.f32.mrf.mxu1 }
 0x105   :  { %v769_v55 = vpop.f32.mrf.mxu0 }
 0x106   :  { %v645_v58 = vmax.f32 %v629_v50, %v631_v52  ;;  %v590_v59 = vadd.f32 %v589_v46, %v493_v53  ;;  %v594_v60 = vpop.f32.mrf.mxu1  ;;  %v770_v22 = vadd.f32 %v769_v55, %v768_v49 }
 0x107   :  { %v771_v61 = vpop.f32.mrf.mxu0 }
 0x108   :  { %v649_v1 = vmax.f32 %v641_v56, %v645_v58  ;;  %v632_v2 = vmax.f32 %v590_v59, 0.0  ;;  %v596_v0 = vpop.f32.mrf.mxu1  ;;  %v498_v30 = vadd.f32 %v770_v22, %v1078_v16 }
 0x109   :  { %v772_v3 = vpop.f32.mrf.mxu0 }
 0x10a   :  { %654 = vst.msk [vmem:[%s1115_s3] sm:$0xff] %vm653_vm1, %v649_v1  ;;  %v646_v5 = vmax.f32 %v630_v63, %v632_v2  ;;  %v597_v6 = vpop.f32.mrf.mxu1  ;;  %v773_v31 = vadd.f32 %v772_v3, %v771_v61  ;;  %v595_v41 = vadd.f32 %v594_v60, %v498_v30 }
 0x10b   :  { %v774_v7 = vpop.f32.mrf.mxu0 }
 0x10c   :  { %v650_v8 = vmax.f32 %v642_v4, %v646_v5  ;;  %v599_v9 = vpop.f32.mrf.mxu1  ;;  %v501_v42 = vadd.f32 %v773_v31, %v1078_v16  ;;  %v633_v54 = vmax.f32 %v595_v41, 0.0 }
 0x10d   :  { %v775_v10 = vpop.f32.mrf.mxu0 }
 0x10e   :  { %655 = vst.msk [vmem:[%s1115_s3 + $0x8] sm:$0xff] %vm653_vm1, %v650_v8  ;;  %v602_v11 = vpop.f32.mrf.mxu1  ;;  %v776_v20 = vadd.f32 %v775_v10, %v774_v7  ;;  %v598_v55 = vadd.f32 %v597_v6, %v501_v42 }
 0x10f   :  { %v777_v12 = vpop.f32.mrf.mxu0 }
 0x110   :  { %v604_v13 = vpop.f32.mrf.mxu1  ;;  %v506_v27 = vadd.f32 %v776_v20, %v1078_v16  ;;  %v634_v2 = vmax.f32 %v598_v55, 0.0 }
 0x111   :  { %v778_v14 = vpop.f32.mrf.mxu0 }
 0x112   :  { %v605_v15 = vpop.f32.mrf.mxu1  ;;  %v779_v28 = vadd.f32 %v778_v14, %v777_v12  ;;  %v603_v37 = vadd.f32 %v602_v11, %v506_v27 }
 0x113   :  { %v780_v17 = vpop.f32.mrf.mxu0 }
 0x114   :  { %v607_v18 = vpop.f32.mrf.mxu1  ;;  %v509_v38 = vadd.f32 %v779_v28, %v1078_v16  ;;  %v635_v49 = vmax.f32 %v603_v37, 0.0 }
 0x115   :  { %v781_v19 = vpop.f32.mrf.mxu0 }
 0x116   :  { %v610_v21 = vpop.f32.mrf.mxu1  ;;  %v782_v24 = vadd.f32 %v781_v19, %v780_v17  ;;  %v606_v50 = vadd.f32 %v605_v15, %v509_v38  ;;  %v643_v61 = vmax.f32 %v633_v54, %v635_v49 }
 0x117   :  { %v783_v23 = vpop.f32.mrf.mxu0 }
 0x118   :  { %v612_v25 = vpop.f32.mrf.mxu1  ;;  %v514_v33 = vadd.f32 %v782_v24, %v1078_v16  ;;  %v636_v62 = vmax.f32 %v606_v50, 0.0 }
 0x119   :  { %v784_v26 = vpop.f32.mrf.mxu0 }
 0x11a   :  { %v613_v29 = vpop.f32.mrf.mxu1  ;;  %v785_v34 = vadd.f32 %v784_v26, %v783_v23  ;;  %v611_v44 = vadd.f32 %v610_v21, %v514_v33  ;;  %v644_v5 = vmax.f32 %v634_v2, %v636_v62 }
 0x11b   :  { %v786_v32 = vpop.f32.mrf.mxu0 }
 0x11c   :  { %v615_v35 = vpop.f32.mrf.mxu1  ;;  %v517_v45 = vadd.f32 %v785_v34, %v1078_v16  ;;  %v637_v56 = vmax.f32 %v611_v44, 0.0 }
 0x11d   :  { %v787_v36 = vpop.f32.mrf.mxu0 }
 0x11e   :  { %v788_v39 = vadd.f32 %v787_v36, %v786_v32  ;;  %v618_v40 = vpop.f32.mrf.mxu1  ;;  %v614_v57 = vadd.f32 %v613_v29, %v517_v45 }
 0x11f   :  { %v789_v43 = vpop.f32.mrf.mxu0 }
 0x120   :  { %v522_v46 = vadd.f32 %v788_v39, %v1078_v16  ;;  %v620_v47 = vpop.f32.mrf.mxu1  ;;  %v638_v0 = vmax.f32 %v614_v57, 0.0 }
 0x121   :  { %v790_v48 = vpop.f32.mrf.mxu0 }
 0x122   :  { %v619_v51 = vadd.f32 %v618_v40, %v522_v46  ;;  %v791_v52 = vadd.f32 %v790_v48, %v789_v43  ;;  %v621_v53 = vpop.f32.mrf.mxu1 }
 0x124   :  { %v639_v58 = vmax.f32 %v619_v51, 0.0  ;;  %v525_v59 = vadd.f32 %v791_v52, %v1078_v16  ;;  %v623_v60 = vpop.f32.mrf.mxu1 }
 0x126   :  { %v647_v63 = vmax.f32 %v637_v56, %v639_v58  ;;  %v622_v1 = vadd.f32 %v621_v53, %v525_v59 }
 0x128   :  { %v651_v3 = vmax.f32 %v643_v61, %v647_v63  ;;  %v640_v4 = vmax.f32 %v622_v1, 0.0 }
 0x12a   :  { %656 = vst.msk [vmem:[%s1115_s3 + $0x10] sm:$0xff] %vm653_vm1, %v651_v3  ;;  %v648_v6 = vmax.f32 %v638_v0, %v640_v4 }
 0x12c   :  { %v652_v7 = vmax.f32 %v644_v5, %v648_v6 }
 0x12e   :  { %657 = vst.msk [vmem:[%s1115_s3 + $0x18] sm:$0xff] %vm653_vm1, %v652_v7 }

// kernel: cnn3_forward.5
= control target key start
LH: loop header
LB: loop body
LE: loop exit
PB: predicated region body
PF: predicated region fallthrough
CT: control target
= control target key end

     0   :  { %v360_v30 = vmov 1983009808   ;;  %v92_v32 = vlaneseq  ;;  %s583_s0 = inlined_call_operand.vmem [shape: f32[2,512], index: 0, kind: input, shape index: {}]   ;;  %s584_s1 = inlined_call_operand.vmem [shape: f32[512,128], index: 1, kind: input, shape index: {}]   ;;  %s585_s2 = inlined_call_operand.vmem [shape: f32[1,128], index: 2, kind: input, shape index: {}]   ;;  %s586_s3 = inlined_call_operand.hbm [shape: f32[2,128], index: 3, kind: output, shape index: {}]  }
   0x1   :  { %v47_v0 = vld [vmem:[%s584_s1 + $0xf8] sm:$0xff]  ;;  %v46_v4 = vld [vmem:[%s584_s1 + $0xf0] sm:$0xff]  ;;  %v45_v8 = vld [vmem:[%s584_s1 + $0xe8] sm:$0xff]  ;;  %v90_v31 = vunpack.c.l.s4 %v360_v30 }
   0x2   :  { %v79_v1 = vld [vmem:[%s584_s1 + $0x1f8] sm:$0xff]  ;;  %265 = vmatprep.subr.mxu0 %v47_v0  ;;  %v78_v5 = vld [vmem:[%s584_s1 + $0x1f0] sm:$0xff]  ;;  %v77_v9 = vld [vmem:[%s584_s1 + $0x1e8] sm:$0xff]  ;;  %v93_v42 = vshrl.u32 %v92_v32, 7 }
   0x3   :  { %v31_v2 = vld [vmem:[%s584_s1 + $0x78] sm:$0xff]  ;;  %300 = vmatprep.subr.mxu1 %v79_v1  ;;  %v30_v6 = vld [vmem:[%s584_s1 + $0x70] sm:$0xff]  ;;  %v29_v10 = vld [vmem:[%s584_s1 + $0x68] sm:$0xff]  ;;  %v91_v41 = vunpack.c.0.s8 %v90_v31 }
   0x4   :  { %v63_v3 = vld [vmem:[%s584_s1 + $0x178] sm:$0xff]  ;;  %266 = vmatpush3.msra.mxu0 %v31_v2  ;;  %v62_v7 = vld [vmem:[%s584_s1 + $0x170] sm:$0xff]  ;;  %v61_v11 = vld [vmem:[%s584_s1 + $0x168] sm:$0xff] }
   0x5   :  { %301 = vmatpush3.msra.mxu1 %v63_v3  ;;  %267 = vmatprep.subr.mxu0 %v46_v4  ;;  %v44_v12 = vld [vmem:[%s584_s1 + $0xe0] sm:$0xff]  ;;  %v43_v16 = vld [vmem:[%s584_s1 + $0xd8] sm:$0xff]  ;;  %v42_v20 = vld [vmem:[%s584_s1 + $0xd0] sm:$0xff]  ;;  %v94_v52 = vsub.s32 %v91_v41, %v93_v42 }
   0x6   :  { %302 = vmatprep.subr.mxu1 %v78_v5  ;;  %268 = vmatpush3.msra.mxu0 %v30_v6  ;;  %v76_v13 = vld [vmem:[%s584_s1 + $0x1e0] sm:$0xff]  ;;  %v75_v17 = vld [vmem:[%s584_s1 + $0x1d8] sm:$0xff]  ;;  %v74_v21 = vld [vmem:[%s584_s1 + $0x1d0] sm:$0xff] }
   0x7   :  { %303 = vmatpush3.msra.mxu1 %v62_v7  ;;  %269 = vmatprep.subr.mxu0 %v45_v8  ;;  %v28_v14 = vld [vmem:[%s584_s1 + $0x60] sm:$0xff]  ;;  %v27_v18 = vld [vmem:[%s584_s1 + $0x58] sm:$0xff]  ;;  %v26_v22 = vld [vmem:[%s584_s1 + $0x50] sm:$0xff] }
   0x8   :  { %304 = vmatprep.subr.mxu1 %v77_v9  ;;  %v60_v15 = vld [vmem:[%s584_s1 + $0x160] sm:$0xff]  ;;  %270 = vmatpush3.msra.mxu0 %v29_v10  ;;  %v59_v19 = vld [vmem:[%s584_s1 + $0x158] sm:$0xff]  ;;  %v58_v23 = vld [vmem:[%s584_s1 + $0x150] sm:$0xff] }
   0x9   :  { %305 = vmatpush3.msra.mxu1 %v61_v11  ;;  %271 = vmatprep.subr.mxu0 %v44_v12  ;;  %v41_v24 = vld [vmem:[%s584_s1 + $0xc8] sm:$0xff]  ;;  %v40_v28 = vld [vmem:[%s584_s1 + $0xc0] sm:$0xff]  ;;  %v39_v35 = vld [vmem:[%s584_s1 + $0xb8] sm:$0xff] }
   0xa   :  { %306 = vmatprep.subr.mxu1 %v76_v13  ;;  %272 = vmatpush3.msra.mxu0 %v28_v14  ;;  %v73_v25 = vld [vmem:[%s584_s1 + $0x1c8] sm:$0xff]  ;;  %v72_v29 = vld [vmem:[%s584_s1 + $0x1c0] sm:$0xff]  ;;  %v71_v36 = vld [vmem:[%s584_s1 + $0x1b8] sm:$0xff] }
   0xb   :  { %307 = vmatpush3.msra.mxu1 %v60_v15  ;;  %273 = vmatprep.subr.mxu0 %v43_v16  ;;  %v25_v26 = vld [vmem:[%s584_s1 + $0x48] sm:$0xff]  ;;  %v24_v33 = vld [vmem:[%s584_s1 + $0x40] sm:$0xff]  ;;  %v23_v37 = vld [vmem:[%s584_s1 + $0x38] sm:$0xff] }
   0xc   :  { %308 = vmatprep.subr.mxu1 %v75_v17  ;;  %274 = vmatpush3.msra.mxu0 %v27_v18  ;;  %v57_v27 = vld [vmem:[%s584_s1 + $0x148] sm:$0xff]  ;;  %v56_v34 = vld [vmem:[%s584_s1 + $0x140] sm:$0xff]  ;;  %v55_v38 = vld [vmem:[%s584_s1 + $0x138] sm:$0xff] }
   0xd   :  { %309 = vmatpush3.msra.mxu1 %v59_v19  ;;  %275 = vmatprep.subr.mxu0 %v42_v20  ;;  %v38_v39 = vld [vmem:[%s584_s1 + $0xb0] sm:$0xff]  ;;  %v37_v45 = vld [vmem:[%s584_s1 + $0xa8] sm:$0xff]  ;;  %v36_v49 = vld [vmem:[%s584_s1 + $0xa0] sm:$0xff] }
   0xe   :  { %310 = vmatprep.subr.mxu1 %v74_v21  ;;  %276 = vmatpush3.msra.mxu0 %v26_v22  ;;  %v70_v40 = vld [vmem:[%s584_s1 + $0x1b0] sm:$0xff]  ;;  %v69_v46 = vld [vmem:[%s584_s1 + $0x1a8] sm:$0xff]  ;;  %v68_v50 = vld [vmem:[%s584_s1 + $0x1a0] sm:$0xff] }
   0xf   :  { %311 = vmatpush3.msra.mxu1 %v58_v23  ;;  %277 = vmatprep.subr.mxu0 %v41_v24  ;;  %v22_v43 = vld [vmem:[%s584_s1 + $0x30] sm:$0xff]  ;;  %v21_v47 = vld [vmem:[%s584_s1 + $0x28] sm:$0xff]  ;;  %v20_v51 = vld [vmem:[%s584_s1 + $0x20] sm:$0xff] }
  0x10   :  { %312 = vmatprep.subr.mxu1 %v73_v25  ;;  %278 = vmatpush3.msra.mxu0 %v25_v26  ;;  %v54_v44 = vld [vmem:[%s584_s1 + $0x130] sm:$0xff]  ;;  %v53_v48 = vld [vmem:[%s584_s1 + $0x128] sm:$0xff]  ;;  %v52_v53 = vld [vmem:[%s584_s1 + $0x120] sm:$0xff] }
  0x11   :  { %313 = vmatpush3.msra.mxu1 %v57_v27  ;;  %279 = vmatprep.subr.mxu0 %v40_v28  ;;  %v15_v54 = vld [vmem:[%s583_s0] sm:$0xff] }
  0x12   :  { %314 = vmatprep.subr.mxu1 %v72_v29  ;;  %280 = vmatpush3.msra.mxu0 %v24_v33 }
  0x13   :  { %315 = vmatpush3.msra.mxu1 %v56_v34  ;;  %281 = vmatprep.subr.mxu0 %v39_v35 }
  0x14   :  { %316 = vmatprep.subr.mxu1 %v71_v36  ;;  %282 = vmatpush3.msra.mxu0 %v23_v37 }
  0x15   :  { %317 = vmatpush3.msra.mxu1 %v55_v38  ;;  %283 = vmatprep.subr.mxu0 %v38_v39 }
  0x16   :  { %318 = vmatprep.subr.mxu1 %v70_v40  ;;  %284 = vmatpush3.msra.mxu0 %v22_v43 }
  0x17   :  { %319 = vmatpush3.msra.mxu1 %v54_v44  ;;  %285 = vmatprep.subr.mxu0 %v37_v45 }
  0x18   :  { %320 = vmatprep.subr.mxu1 %v69_v46 }
  0x19   :  { %8 = vsyncpa [#allocation3], 0  ;;  %286 = vmatpush3.msra.mxu0 %v21_v47  ;;  %321 = vmatpush3.msra.mxu1 %v53_v48  ;;  %v35_v55 = vld [vmem:[%s584_s1 + $0x98] sm:$0xff]  ;;  %v88_v57 = vcombine.high %v15_v54, %v15_v54  ;;  %v34_v60 = vld [vmem:[%s584_s1 + $0x90] sm:$0xff]  ;;  %v95_v62 = vrot.slane %v15_v54, %v94_v52  ;;  %s361_s8 = smov [#allocation2]  }
  0x1a   :  { %v67_v56 = vld [vmem:[%s584_s1 + $0x198] sm:$0xff]  ;;  %287 = vmatprep.subr.mxu0 %v36_v49  ;;  %322 = vmatprep.subr.mxu1 %v68_v50  ;;  %v66_v61 = vld [vmem:[%s584_s1 + $0x190] sm:$0xff]  ;;  %v33_v2 = vld [vmem:[%s584_s1 + $0x88] sm:$0xff]  ;;  %s256_s0 = sshll.u32 %s361_s8, 4  ;;  %s257_s0 = int_to_ptr.vmem [resolvable:$true] %s256_s0 }
  0x1b   :  { %v19_v58 = vld [vmem:[%s584_s1 + $0x18] sm:$0xff]  ;;  %288 = vmatpush3.msra.mxu0 %v20_v51  ;;  %323 = vmatpush3.msra.mxu1 %v52_v53  ;;  %v18_v63 = vld [vmem:[%s584_s1 + $0x10] sm:$0xff]  ;;  %v102_v1 = vrot.slane %v88_v57, %v94_v52  ;;  %v65_v3 = vld [vmem:[%s584_s1 + $0x188] sm:$0xff]  ;;  %v103_v8 = vcombine.high %v95_v62, %v95_v62  ;;  %p343_p1 = scmp.lt.s32.totalorder %s257_s0, %s257_s0 }
  0x1c   :  { %v51_v59 = vld [vmem:[%s584_s1 + $0x118] sm:$0xff]  ;;  %289 = vmatprep.subr.mxu0 %v35_v55  ;;  %324 = vmatprep.subr.mxu1 %v67_v56  ;;  %v50_v0 = vld [vmem:[%s584_s1 + $0x110] sm:$0xff]  ;;  %v17_v4 = vld [vmem:[%s584_s1 + $0x8] sm:$0xff] }
  0x1d   :  { %290 = vmatpush3.msra.mxu0 %v19_v58  ;;  %325 = vmatpush3.msra.mxu1 %v51_v59  ;;  %v49_v5 = vld [vmem:[%s584_s1 + $0x108] sm:$0xff]  ;;  %v32_v6 = vld [vmem:[%s584_s1 + $0x80] sm:$0xff]  ;;  %v104_v10 = vcombine.high %v102_v1, %v102_v1 }
  0x1e   :  { %291 = vmatprep.subr.mxu0 %v34_v60  ;;  %326 = vmatprep.subr.mxu1 %v66_v61  ;;  %v64_v7 = vld [vmem:[%s584_s1 + $0x180] sm:$0xff] }
  0x1f   :  { %292 = vmatpush3.msra.mxu0 %v18_v63  ;;  %327 = vmatpush3.msra.mxu1 %v50_v0  ;;  %v16_v9 = vld [vmem:[%s584_s1] sm:$0xff] }
  0x20   :  { %293 = vmatprep.subr.mxu0 %v33_v2  ;;  %328 = vmatprep.subr.mxu1 %v65_v3  ;;  %v48_v11 = vld [vmem:[%s584_s1 + $0x100] sm:$0xff]  ;;  %s338_s1 = scalar_lea.vmem %s257_s0, 32 }
  0x21   :  { %294 = vmatpush3.msra.mxu0 %v17_v4  ;;  %329 = vmatpush3.msra.mxu1 %v49_v5  ;;  %v264_v14 = vld [vmem:[%s585_s2] ss:$0 sm:$0xff]  ;;  %p339_p0 = scmp.ne.s32.totalorder %s257_s0, %s338_s1  ;;  %p344_p2 = scmp.lt.s32.totalorder %s338_s1, %s338_s1 }
  0x22   :  { %295 = vmatprep.subr.mxu0 %v32_v6  ;;  %330 = vmatprep.subr.mxu1 %v64_v7 }
  0x23   :  { %296 = vmatpush3.msra.mxu0 %v16_v9  ;;  %173 = vmatprep.mubr.f32.mxu0 %v103_v8  ;;  %p345_p3 = por %p344_p2, %p343_p1 }
  0x24   :  { %331 = vmatpush3.msra.mxu1 %v48_v11  ;;  %243 = vmatprep.mubr.f32.mxu1 %v104_v10 }
  0x25   :  { %174 = vmatmul.mubr.f32.vlgmr.msra.gmra.mxu0 %v95_v62  ;;  %244 = vmatmul.mubr.f32.vlgmr.msra.gmra.mxu1 %v102_v1  ;;  %p346_p4 = pnand %p345_p3, %p339_p0 }
  0xe5   :  { %v297_v12 = vpop.f32.mrf.mxu0  ;;  %v332_v13 = vpop.f32.mrf.mxu1 }
  0xe7   :  { %v298_v15 = vpop.f32.mrf.mxu0  ;;  %v333_v16 = vpop.f32.mrf.mxu1 }
  0xe8   :  { %v299_v17 = vadd.f32 %v298_v15, %v297_v12  ;;  %v334_v19 = vadd.f32 %v333_v16, %v332_v13 }
  0xea   :  { %v176_v18 = vadd.f32 %v299_v17, %v264_v14 }
  0xec   :  { %v246_v20 = vadd.f32 %v334_v19, %v176_v18 }
  0xee   :  { %249 = vst [vmem:[#allocation2] sm:$0x3] %v246_v20 }
  0xef   :  { %349 = shalt.err (!%p346_p4)
}
  0xf0   :  { %259 = dma.vmem_to_hbm [thread:$0]  %s257_s0, 32, %s586_s3, [#allocation3]  }
  0xf1   :  { %358 = dma.done.wait [#allocation3], 32  }
  0xf2   :  { %359 = vsyncadd [#allocation3], 4294967264 }
  0xf3   :  { %263 = vsyncpa [#allocation3], 1 }

</bundles_post_ra>
